<compile_context>
chip_gen: v5e
topology: v5e:2x2
jax: 0.10.0
libtpu: 0.0.40
codegen_flags: <defaults>
</compile_context>

<pallas_src>
import functools
import math

import jax
import jax.numpy as jnp
from jax.experimental import pallas as pl
from jax.experimental.pallas import tpu as pltpu


# ---------------------------------------------------------------------------
# Fused Pallas kernel
# ---------------------------------------------------------------------------
def _fused_dqn_kernel(p_ref, w1_ref, b1_ref, w2_ref, b2_ref, w3_ref, b3_ref,
                      w4_ref, b4_ref, w5_ref, b5_ref, out_ref, feat_ref, *, S):
    """p_ref: (S, TB, C*16) bf16 patches; out_ref: (TB, OUT_PAD) f32.

    conv tower runs once per surviving spatial position s (S is small); each
    position's 64-channel conv3 output is packed into the feature scratch at
    columns [s*64, (s+1)*64) so noisy1 can consume it with no transpose.
    """
    for s in range(S):                                          # static unroll
        xs = p_ref[s]                                           # (TB, C*16) bf16
        # conv1 (4x4 / stride 4 as matmul; 1/255 folded into w1) + ReLU
        h = jnp.dot(xs, w1_ref[...], preferred_element_type=jnp.float32)
        h = jnp.maximum(h + b1_ref[...], 0.0)                   # (TB, 32) f32
        # conv2 (1x1) + ReLU
        h = jnp.dot(h.astype(jnp.bfloat16), w2_ref[...],
                    preferred_element_type=jnp.float32)
        h = jnp.maximum(h + b2_ref[...], 0.0)                   # (TB, 64)
        # conv3 (1x1) + ReLU
        h = jnp.dot(h.astype(jnp.bfloat16), w3_ref[...],
                    preferred_element_type=jnp.float32)
        h = jnp.maximum(h + b3_ref[...], 0.0)                   # (TB, 64)
        feat_ref[:, s * 64:(s + 1) * 64] = h.astype(jnp.bfloat16)

    feat = feat_ref[...]                                        # (TB, S*64) bf16
    # noisy1 (weight columns pre-permuted to the (s, c) feature order) + ReLU
    h = jnp.dot(feat, w4_ref[...], preferred_element_type=jnp.float32)
    h = jnp.maximum(h + b4_ref[...], 0.0)                       # (TB, 512)
    # noisy2 -> lane-padded Q values
    q = jnp.dot(h.astype(jnp.bfloat16), w5_ref[...],
                preferred_element_type=jnp.float32)
    out_ref[...] = q + b5_ref[...]                              # (TB, OUT_PAD)


def _fused_forward(patches, kp, *, TB, S, CK, out_pad):
    """patches: (S, N_pad, CK) bf16 -> (N_pad, out_pad) f32 Q values."""
    _, n_pad, _ = patches.shape
    grid = (n_pad // TB,)
    const2 = lambda i: (0, 0)

    return pl.pallas_call(
        functools.partial(_fused_dqn_kernel, S=S),
        out_shape=jax.ShapeDtypeStruct((n_pad, out_pad), jnp.float32),
        grid=grid,
        in_specs=[
            pl.BlockSpec((S, TB, CK), lambda i: (0, i, 0)),     # patches tile
            pl.BlockSpec(kp["w1"].shape, const2),               # weights/biases:
            pl.BlockSpec(kp["b1"].shape, const2),               # constant index
            pl.BlockSpec(kp["w2"].shape, const2),               # map -> fetched
            pl.BlockSpec(kp["b2"].shape, const2),               # once, resident
            pl.BlockSpec(kp["w3"].shape, const2),               # in VMEM across
            pl.BlockSpec(kp["b3"].shape, const2),               # the whole grid
            pl.BlockSpec(kp["w4"].shape, const2),
            pl.BlockSpec(kp["b4"].shape, const2),
            pl.BlockSpec(kp["w5"].shape, const2),
            pl.BlockSpec(kp["b5"].shape, const2),
        ],
        out_specs=pl.BlockSpec((TB, out_pad), lambda i: (i, 0)),
        scratch_shapes=[pltpu.VMEM((TB, S * 64), jnp.bfloat16)],
        compiler_params=pltpu.CompilerParams(
            dimension_semantics=("parallel",)),
    )(patches, kp["w1"], kp["b1"], kp["w2"], kp["b2"], kp["w3"], kp["b3"],
      kp["w4"], kp["b4"], kp["w5"], kp["b5"])


# ---------------------------------------------------------------------------
# Deterministic parameter construction (mirrors the PyTorch __init__)
# ---------------------------------------------------------------------------
def _uniform(key, shape, bound):
    return jax.random.uniform(key, shape, jnp.float32, -bound, bound)


def _scale_noise(key, size):
    x = jax.random.normal(key, (size,), jnp.float32)
    return jnp.sign(x) * jnp.sqrt(jnp.abs(x))


def _noisy_linear_params(key, in_f, out_f, std_init=0.4):
    k_wmu, k_bmu, k_ein, k_eout, k_beps = jax.random.split(key, 5)
    mu_range = 1.0 / math.sqrt(in_f)
    weight_mu = _uniform(k_wmu, (out_f, in_f), mu_range)
    weight_sigma = jnp.full((out_f, in_f), std_init / math.sqrt(in_f), jnp.float32)
    bias_mu = _uniform(k_bmu, (out_f,), mu_range)
    bias_sigma = jnp.full((out_f,), std_init / math.sqrt(out_f), jnp.float32)
    eps_in = _scale_noise(k_ein, in_f)
    eps_out = _scale_noise(k_eout, out_f)
    weight_eps = jnp.outer(eps_out, eps_in)
    bias_eps = _scale_noise(k_beps, out_f)
    # training-mode effective parameters (noise folded in glue, not in-kernel)
    weight = weight_mu + weight_sigma * weight_eps               # (out_f, in_f)
    bias = bias_mu + bias_sigma * bias_eps                       # (out_f,)
    return weight, bias


def _conv_params(key, out_ch, in_ch, kh, kw):
    k_w, k_b = jax.random.split(key)
    bound = 1.0 / math.sqrt(in_ch * kh * kw)
    w = _uniform(k_w, (out_ch, in_ch, kh, kw), bound)            # PyTorch OIHW
    b = _uniform(k_b, (out_ch,), bound)
    return w, b


def _spatial_sizes(H, W):
    h1 = (H - 4) // 4 + 1                 # conv1 k4 s4
    w1 = (W - 4) // 4 + 1
    h2 = (h1 - 1) // 2 + 1                # conv2 k1 s2
    w2 = (w1 - 1) // 2 + 1                # conv3 k1 s1 keeps size
    return h2, w2


def init_noisy_cnn_dqn(key, input_shape, num_actions):
    C, H, W = input_shape
    H2, W2 = _spatial_sizes(H, W)
    feature_size = 64 * H2 * W2
    keys = jax.random.split(key, 5)
    p = {}
    p["conv1_w"], p["conv1_b"] = _conv_params(keys[0], 32, C, 4, 4)
    p["conv2_w"], p["conv2_b"] = _conv_params(keys[1], 64, 32, 1, 1)
    p["conv3_w"], p["conv3_b"] = _conv_params(keys[2], 64, 64, 1, 1)
    p["noisy1_w"], p["noisy1_b"] = _noisy_linear_params(keys[3], feature_size, 512)
    p["noisy2_w"], p["noisy2_b"] = _noisy_linear_params(keys[4], 512, num_actions)
    return p


def prepare_kernel_params(params, input_shape, num_actions):
    """One-time fold: bf16 cast, 1/255 fold, noisy1 column permutation, padding."""
    C, H, W = input_shape
    H2, W2 = _spatial_sizes(H, W)
    S = H2 * W2
    out_pad = ((num_actions + 127) // 128) * 128

    kp = {"H2": H2, "W2": W2, "S": S,
          "num_actions": num_actions, "out_pad": out_pad}
    # conv1: OIHW -> (C*kh*kw, 32), input 1/255 scale folded into the weight
    kp["w1"] = (params["conv1_w"].reshape(32, C * 16).T / 255.0).astype(jnp.bfloat16)
    kp["b1"] = params["conv1_b"].reshape(1, 32).astype(jnp.float32)
    kp["w2"] = params["conv2_w"].reshape(64, 32).T.astype(jnp.bfloat16)
    kp["b2"] = params["conv2_b"].reshape(1, 64).astype(jnp.float32)
    kp["w3"] = params["conv3_w"].reshape(64, 64).T.astype(jnp.bfloat16)
    kp["b3"] = params["conv3_b"].reshape(1, 64).astype(jnp.float32)
    # noisy1: permute columns once so it consumes the in-kernel (s, c) feature
    # layout directly -> no per-forward NHWC->NCHW transpose of activations.
    w4 = (params["noisy1_w"].reshape(512, 64, S)
          .transpose(2, 1, 0).reshape(S * 64, 512))
    kp["w4"] = w4.astype(jnp.bfloat16)
    kp["b4"] = params["noisy1_b"].reshape(1, 512).astype(jnp.float32)
    # noisy2: transpose + pad action dim to a lane-dense multiple of 128
    w5 = jnp.zeros((512, out_pad), jnp.float32)
    w5 = w5.at[:, :num_actions].set(params["noisy2_w"].T)
    kp["w5"] = w5.astype(jnp.bfloat16)
    b5 = jnp.zeros((1, out_pad), jnp.float32)
    kp["b5"] = b5.at[0, :num_actions].set(params["noisy2_b"])
    return kp


# ---------------------------------------------------------------------------
# Forward pass
# ---------------------------------------------------------------------------
def noisy_cnn_dqn_forward(x, kp):
    """x: (N, C, H, W) float32 in [0, 255]; returns (N, num_actions) float32."""
    N, C, H, W = x.shape
    H2, W2, S = kp["H2"], kp["W2"], kp["S"]
    CK = C * 16

    # conv1 4x4 patches only at the positions that survive conv2's stride-2
    # subsample (input stride 8); matches PyTorch floor() output sizes exactly.
    rows = (jnp.arange(H2) * 8)[:, None] + jnp.arange(4)[None, :]   # (H2, 4)
    cols = (jnp.arange(W2) * 8)[:, None] + jnp.arange(4)[None, :]   # (W2, 4)
    xw = x[:, :, rows][:, :, :, :, cols]            # (N, C, H2, 4, W2, 4)
    patches = (xw.transpose(2, 4, 0, 1, 3, 5)       # (H2, W2, N, C, 4, 4)
               .reshape(S, N, CK))                  # columns = c*16 + kh*4 + kw

    # Batch tiling: full-array blocks for tiny batches, 8/32-row tiles
    # (multiples of 8 sublanes, grid marked "parallel") otherwise.
    if N <= 8:
        TB = N
    elif N < 32:
        TB = 8
    else:
        TB = 32
    n_pad = ((N + TB - 1) // TB) * TB
    if n_pad != N:
        patches = jnp.pad(patches, ((0, 0), (0, n_pad - N), (0, 0)))
    patches = patches.astype(jnp.bfloat16)          # pixel ints <=256 are exact

    q_pad = _fused_forward(patches, kp, TB=TB, S=S, CK=CK, out_pad=kp["out_pad"])
    return q_pad[:N, :kp["num_actions"]]


# ---------------------------------------------------------------------------
# Pure-JAX (f32, XLA conv) reference for a loose sanity check
# ---------------------------------------------------------------------------
def reference_forward(x, params):
    dn = ("NCHW", "OIHW", "NCHW")
    h = x.astype(jnp.float32) / 255.0
    h = jax.lax.conv_general_dilated(h, params["conv1_w"], (4, 4), "VALID",
                                     dimension_numbers=dn)
    h = jax.nn.relu(h + params["conv1_b"][None, :, None, None])
    h = jax.lax.conv_general_dilated(h, params["conv2_w"], (2, 2), "VALID",
                                     dimension_numbers=dn)
    h = jax.nn.relu(h + params["conv2_b"][None, :, None, None])
    h = jax.lax.conv_general_dilated(h, params["conv3_w"], (1, 1), "VALID",
                                     dimension_numbers=dn)
    h = jax.nn.relu(h + params["conv3_b"][None, :, None, None])
    feat = h.reshape(h.shape[0], -1)                       # NCHW flatten
    h = jax.nn.relu(feat @ params["noisy1_w"].T + params["noisy1_b"])
    return h @ params["noisy2_w"].T + params["noisy2_b"]


# ---------------------------------------------------------------------------
if __name__ == "__main__":
    key = jax.random.PRNGKey(0)
    k_params, k_x = jax.random.split(key)

    input_shape = (4, 16, 16)      # (C, H, W)
    num_actions = 6
    batch = 2

    params = init_noisy_cnn_dqn(k_params, input_shape, num_actions)
    kp = prepare_kernel_params(params, input_shape, num_actions)

    # pixel-like input in [0, 255]
    x = jax.random.uniform(k_x, (batch,) + input_shape, jnp.float32, 0.0, 255.0)

    q = noisy_cnn_dqn_forward(x, kp)
    q = jax.block_until_ready(q)
    assert q.shape == (batch, num_actions), q.shape
    assert q.dtype == jnp.float32
    assert bool(jnp.all(jnp.isfinite(q)))

    # loose agreement check vs. f32 XLA reference (kernel uses bf16 MXU inputs)
    q_ref = reference_forward(x, params)
    rel = float(jnp.max(jnp.abs(q - q_ref)) / (jnp.max(jnp.abs(q_ref)) + 1e-6))
    assert rel < 0.15, f"relative error too large: {rel}"

    print("KERNEL_OK")
</pallas_src>

<mosaic_0001>
module attributes {stable_mosaic.version = 11 : i64} {
  func.func @_fused_dqn_kernel(%arg0: i32, %arg1: memref<4x2x64xbf16, #tpu.memory_space<vmem>>, %arg2: memref<64x32xbf16, #tpu.memory_space<vmem>>, %arg3: memref<1x32xf32, #tpu.memory_space<vmem>>, %arg4: memref<32x64xbf16, #tpu.memory_space<vmem>>, %arg5: memref<1x64xf32, #tpu.memory_space<vmem>>, %arg6: memref<64x64xbf16, #tpu.memory_space<vmem>>, %arg7: memref<1x64xf32, #tpu.memory_space<vmem>>, %arg8: memref<256x512xbf16, #tpu.memory_space<vmem>>, %arg9: memref<1x512xf32, #tpu.memory_space<vmem>>, %arg10: memref<512x128xbf16, #tpu.memory_space<vmem>>, %arg11: memref<1x128xf32, #tpu.memory_space<vmem>>, %arg12: memref<2x128xf32, #tpu.memory_space<vmem>>, %arg13: memref<2x256xbf16, #tpu.memory_space<vmem>>) attributes {dimension_semantics = [#tpu.dimension_semantics<parallel>], iteration_bounds = array<i64: 1>, scalar_prefetch = 0 : i64, scratch_operands = 1 : i64, tpu.core_type = #tpu.core_type<tc>, window_params = [{transform_indices = @transform_0, window_bounds = array<i64: 4, 2, 64>}, {pipeline_mode = #tpu.pipeline_mode<synchronous>, transform_indices = @transform_1, window_bounds = array<i64: 64, 32>}, {pipeline_mode = #tpu.pipeline_mode<synchronous>, transform_indices = @transform_2, window_bounds = array<i64: 1, 32>}, {pipeline_mode = #tpu.pipeline_mode<synchronous>, transform_indices = @transform_3, window_bounds = array<i64: 32, 64>}, {pipeline_mode = #tpu.pipeline_mode<synchronous>, transform_indices = @transform_4, window_bounds = array<i64: 1, 64>}, {pipeline_mode = #tpu.pipeline_mode<synchronous>, transform_indices = @transform_5, window_bounds = array<i64: 64, 64>}, {pipeline_mode = #tpu.pipeline_mode<synchronous>, transform_indices = @transform_6, window_bounds = array<i64: 1, 64>}, {pipeline_mode = #tpu.pipeline_mode<synchronous>, transform_indices = @transform_7, window_bounds = array<i64: 256, 512>}, {pipeline_mode = #tpu.pipeline_mode<synchronous>, transform_indices = @transform_8, window_bounds = array<i64: 1, 512>}, {pipeline_mode = #tpu.pipeline_mode<synchronous>, transform_indices = @transform_9, window_bounds = array<i64: 512, 128>}, {pipeline_mode = #tpu.pipeline_mode<synchronous>, transform_indices = @transform_10, window_bounds = array<i64: 1, 128>}, {transform_indices = @transform_11, window_bounds = array<i64: 2, 128>}]} {
    %c0 = arith.constant 0 : index
    %c0_0 = arith.constant 0 : index
    %c0_1 = arith.constant 0 : index
    %0 = vector.load %arg1[%c0, %c0_0, %c0_1] : memref<4x2x64xbf16, #tpu.memory_space<vmem>>, vector<1x2x64xbf16>
    %1 = vector.shape_cast %0 : vector<1x2x64xbf16> to vector<2x64xbf16>
    %c0_2 = arith.constant 0 : index
    %c0_3 = arith.constant 0 : index
    %2 = vector.load %arg2[%c0_2, %c0_3] : memref<64x32xbf16, #tpu.memory_space<vmem>>, vector<64x32xbf16>
    %cst = arith.constant dense<0.000000e+00> : vector<2x32xf32>
    %3 = tpu.matmul %1, %2, %cst {dimension_numbers = #tpu.dot_dimension_numbers<[1], [0], [0], [1], [0, 0, 1, 1], [], []>} : vector<2x64xbf16>, vector<64x32xbf16>, vector<2x32xf32> -> vector<2x32xf32>
    %c0_4 = arith.constant 0 : index
    %c0_5 = arith.constant 0 : index
    %4 = vector.load %arg3[%c0_4, %c0_5] : memref<1x32xf32, #tpu.memory_space<vmem>>, vector<1x32xf32>
    %5 = vector.broadcast %4 : vector<1x32xf32> to vector<2x32xf32>
    %6 = arith.addf %3, %5 : vector<2x32xf32>
    %cst_6 = arith.constant 0.000000e+00 : f32
    %7 = vector.broadcast %cst_6 : f32 to vector<2x32xf32>
    %8 = arith.maximumf %6, %7 : vector<2x32xf32>
    %9 = arith.truncf %8 : vector<2x32xf32> to vector<2x32xbf16>
    %c0_7 = arith.constant 0 : index
    %c0_8 = arith.constant 0 : index
    %10 = vector.load %arg4[%c0_7, %c0_8] : memref<32x64xbf16, #tpu.memory_space<vmem>>, vector<32x64xbf16>
    %cst_9 = arith.constant dense<0.000000e+00> : vector<2x64xf32>
    %11 = tpu.matmul %9, %10, %cst_9 {dimension_numbers = #tpu.dot_dimension_numbers<[1], [0], [0], [1], [0, 0, 1, 1], [], []>} : vector<2x32xbf16>, vector<32x64xbf16>, vector<2x64xf32> -> vector<2x64xf32>
    %c0_10 = arith.constant 0 : index
    %c0_11 = arith.constant 0 : index
    %12 = vector.load %arg5[%c0_10, %c0_11] : memref<1x64xf32, #tpu.memory_space<vmem>>, vector<1x64xf32>
    %13 = vector.broadcast %12 : vector<1x64xf32> to vector<2x64xf32>
    %14 = arith.addf %11, %13 : vector<2x64xf32>
    %cst_12 = arith.constant 0.000000e+00 : f32
    %15 = vector.broadcast %cst_12 : f32 to vector<2x64xf32>
    %16 = arith.maximumf %14, %15 : vector<2x64xf32>
    %17 = arith.truncf %16 : vector<2x64xf32> to vector<2x64xbf16>
    %c0_13 = arith.constant 0 : index
    %c0_14 = arith.constant 0 : index
    %18 = vector.load %arg6[%c0_13, %c0_14] : memref<64x64xbf16, #tpu.memory_space<vmem>>, vector<64x64xbf16>
    %cst_15 = arith.constant dense<0.000000e+00> : vector<2x64xf32>
    %19 = tpu.matmul %17, %18, %cst_15 {dimension_numbers = #tpu.dot_dimension_numbers<[1], [0], [0], [1], [0, 0, 1, 1], [], []>} : vector<2x64xbf16>, vector<64x64xbf16>, vector<2x64xf32> -> vector<2x64xf32>
    %c0_16 = arith.constant 0 : index
    %c0_17 = arith.constant 0 : index
    %20 = vector.load %arg7[%c0_16, %c0_17] : memref<1x64xf32, #tpu.memory_space<vmem>>, vector<1x64xf32>
    %21 = vector.broadcast %20 : vector<1x64xf32> to vector<2x64xf32>
    %22 = arith.addf %19, %21 : vector<2x64xf32>
    %cst_18 = arith.constant 0.000000e+00 : f32
    %23 = vector.broadcast %cst_18 : f32 to vector<2x64xf32>
    %24 = arith.maximumf %22, %23 : vector<2x64xf32>
    %25 = arith.truncf %24 : vector<2x64xf32> to vector<2x64xbf16>
    %c0_19 = arith.constant 0 : index
    %c0_20 = arith.constant 0 : index
    %26 = vector.load %arg13[%c0_19, %c0_20] : memref<2x256xbf16, #tpu.memory_space<vmem>>, vector<2x64xbf16>
    tpu.vector_store %arg13[%c0_19, %c0_20], %25 {strides = array<i32>} : memref<2x256xbf16, #tpu.memory_space<vmem>>, vector<2x64xbf16>,
    %c1 = arith.constant 1 : index
    %c0_21 = arith.constant 0 : index
    %c0_22 = arith.constant 0 : index
    %27 = vector.load %arg1[%c1, %c0_21, %c0_22] : memref<4x2x64xbf16, #tpu.memory_space<vmem>>, vector<1x2x64xbf16>
    %28 = vector.shape_cast %27 : vector<1x2x64xbf16> to vector<2x64xbf16>
    %c0_23 = arith.constant 0 : index
    %c0_24 = arith.constant 0 : index
    %29 = vector.load %arg2[%c0_23, %c0_24] : memref<64x32xbf16, #tpu.memory_space<vmem>>, vector<64x32xbf16>
    %cst_25 = arith.constant dense<0.000000e+00> : vector<2x32xf32>
    %30 = tpu.matmul %28, %29, %cst_25 {dimension_numbers = #tpu.dot_dimension_numbers<[1], [0], [0], [1], [0, 0, 1, 1], [], []>} : vector<2x64xbf16>, vector<64x32xbf16>, vector<2x32xf32> -> vector<2x32xf32>
    %c0_26 = arith.constant 0 : index
    %c0_27 = arith.constant 0 : index
    %31 = vector.load %arg3[%c0_26, %c0_27] : memref<1x32xf32, #tpu.memory_space<vmem>>, vector<1x32xf32>
    %32 = vector.broadcast %31 : vector<1x32xf32> to vector<2x32xf32>
    %33 = arith.addf %30, %32 : vector<2x32xf32>
    %cst_28 = arith.constant 0.000000e+00 : f32
    %34 = vector.broadcast %cst_28 : f32 to vector<2x32xf32>
    %35 = arith.maximumf %33, %34 : vector<2x32xf32>
    %36 = arith.truncf %35 : vector<2x32xf32> to vector<2x32xbf16>
    %c0_29 = arith.constant 0 : index
    %c0_30 = arith.constant 0 : index
    %37 = vector.load %arg4[%c0_29, %c0_30] : memref<32x64xbf16, #tpu.memory_space<vmem>>, vector<32x64xbf16>
    %cst_31 = arith.constant dense<0.000000e+00> : vector<2x64xf32>
    %38 = tpu.matmul %36, %37, %cst_31 {dimension_numbers = #tpu.dot_dimension_numbers<[1], [0], [0], [1], [0, 0, 1, 1], [], []>} : vector<2x32xbf16>, vector<32x64xbf16>, vector<2x64xf32> -> vector<2x64xf32>
    %c0_32 = arith.constant 0 : index
    %c0_33 = arith.constant 0 : index
    %39 = vector.load %arg5[%c0_32, %c0_33] : memref<1x64xf32, #tpu.memory_space<vmem>>, vector<1x64xf32>
    %40 = vector.broadcast %39 : vector<1x64xf32> to vector<2x64xf32>
    %41 = arith.addf %38, %40 : vector<2x64xf32>
    %cst_34 = arith.constant 0.000000e+00 : f32
    %42 = vector.broadcast %cst_34 : f32 to vector<2x64xf32>
    %43 = arith.maximumf %41, %42 : vector<2x64xf32>
    %44 = arith.truncf %43 : vector<2x64xf32> to vector<2x64xbf16>
    %c0_35 = arith.constant 0 : index
    %c0_36 = arith.constant 0 : index
    %45 = vector.load %arg6[%c0_35, %c0_36] : memref<64x64xbf16, #tpu.memory_space<vmem>>, vector<64x64xbf16>
    %cst_37 = arith.constant dense<0.000000e+00> : vector<2x64xf32>
    %46 = tpu.matmul %44, %45, %cst_37 {dimension_numbers = #tpu.dot_dimension_numbers<[1], [0], [0], [1], [0, 0, 1, 1], [], []>} : vector<2x64xbf16>, vector<64x64xbf16>, vector<2x64xf32> -> vector<2x64xf32>
    %c0_38 = arith.constant 0 : index
    %c0_39 = arith.constant 0 : index
    %47 = vector.load %arg7[%c0_38, %c0_39] : memref<1x64xf32, #tpu.memory_space<vmem>>, vector<1x64xf32>
    %48 = vector.broadcast %47 : vector<1x64xf32> to vector<2x64xf32>
    %49 = arith.addf %46, %48 : vector<2x64xf32>
    %cst_40 = arith.constant 0.000000e+00 : f32
    %50 = vector.broadcast %cst_40 : f32 to vector<2x64xf32>
    %51 = arith.maximumf %49, %50 : vector<2x64xf32>
    %52 = arith.truncf %51 : vector<2x64xf32> to vector<2x64xbf16>
    %c0_41 = arith.constant 0 : index
    %c64 = arith.constant 64 : index
    %53 = vector.load %arg13[%c0_41, %c64] : memref<2x256xbf16, #tpu.memory_space<vmem>>, vector<2x64xbf16>
    tpu.vector_store %arg13[%c0_41, %c64], %52 {strides = array<i32>} : memref<2x256xbf16, #tpu.memory_space<vmem>>, vector<2x64xbf16>,
    %c2 = arith.constant 2 : index
    %c0_42 = arith.constant 0 : index
    %c0_43 = arith.constant 0 : index
    %54 = vector.load %arg1[%c2, %c0_42, %c0_43] : memref<4x2x64xbf16, #tpu.memory_space<vmem>>, vector<1x2x64xbf16>
    %55 = vector.shape_cast %54 : vector<1x2x64xbf16> to vector<2x64xbf16>
    %c0_44 = arith.constant 0 : index
    %c0_45 = arith.constant 0 : index
    %56 = vector.load %arg2[%c0_44, %c0_45] : memref<64x32xbf16, #tpu.memory_space<vmem>>, vector<64x32xbf16>
    %cst_46 = arith.constant dense<0.000000e+00> : vector<2x32xf32>
    %57 = tpu.matmul %55, %56, %cst_46 {dimension_numbers = #tpu.dot_dimension_numbers<[1], [0], [0], [1], [0, 0, 1, 1], [], []>} : vector<2x64xbf16>, vector<64x32xbf16>, vector<2x32xf32> -> vector<2x32xf32>
    %c0_47 = arith.constant 0 : index
    %c0_48 = arith.constant 0 : index
    %58 = vector.load %arg3[%c0_47, %c0_48] : memref<1x32xf32, #tpu.memory_space<vmem>>, vector<1x32xf32>
    %59 = vector.broadcast %58 : vector<1x32xf32> to vector<2x32xf32>
    %60 = arith.addf %57, %59 : vector<2x32xf32>
    %cst_49 = arith.constant 0.000000e+00 : f32
    %61 = vector.broadcast %cst_49 : f32 to vector<2x32xf32>
    %62 = arith.maximumf %60, %61 : vector<2x32xf32>
    %63 = arith.truncf %62 : vector<2x32xf32> to vector<2x32xbf16>
    %c0_50 = arith.constant 0 : index
    %c0_51 = arith.constant 0 : index
    %64 = vector.load %arg4[%c0_50, %c0_51] : memref<32x64xbf16, #tpu.memory_space<vmem>>, vector<32x64xbf16>
    %cst_52 = arith.constant dense<0.000000e+00> : vector<2x64xf32>
    %65 = tpu.matmul %63, %64, %cst_52 {dimension_numbers = #tpu.dot_dimension_numbers<[1], [0], [0], [1], [0, 0, 1, 1], [], []>} : vector<2x32xbf16>, vector<32x64xbf16>, vector<2x64xf32> -> vector<2x64xf32>
    %c0_53 = arith.constant 0 : index
    %c0_54 = arith.constant 0 : index
    %66 = vector.load %arg5[%c0_53, %c0_54] : memref<1x64xf32, #tpu.memory_space<vmem>>, vector<1x64xf32>
    %67 = vector.broadcast %66 : vector<1x64xf32> to vector<2x64xf32>
    %68 = arith.addf %65, %67 : vector<2x64xf32>
    %cst_55 = arith.constant 0.000000e+00 : f32
    %69 = vector.broadcast %cst_55 : f32 to vector<2x64xf32>
    %70 = arith.maximumf %68, %69 : vector<2x64xf32>
    %71 = arith.truncf %70 : vector<2x64xf32> to vector<2x64xbf16>
    %c0_56 = arith.constant 0 : index
    %c0_57 = arith.constant 0 : index
    %72 = vector.load %arg6[%c0_56, %c0_57] : memref<64x64xbf16, #tpu.memory_space<vmem>>, vector<64x64xbf16>
    %cst_58 = arith.constant dense<0.000000e+00> : vector<2x64xf32>
    %73 = tpu.matmul %71, %72, %cst_58 {dimension_numbers = #tpu.dot_dimension_numbers<[1], [0], [0], [1], [0, 0, 1, 1], [], []>} : vector<2x64xbf16>, vector<64x64xbf16>, vector<2x64xf32> -> vector<2x64xf32>
    %c0_59 = arith.constant 0 : index
    %c0_60 = arith.constant 0 : index
    %74 = vector.load %arg7[%c0_59, %c0_60] : memref<1x64xf32, #tpu.memory_space<vmem>>, vector<1x64xf32>
    %75 = vector.broadcast %74 : vector<1x64xf32> to vector<2x64xf32>
    %76 = arith.addf %73, %75 : vector<2x64xf32>
    %cst_61 = arith.constant 0.000000e+00 : f32
    %77 = vector.broadcast %cst_61 : f32 to vector<2x64xf32>
    %78 = arith.maximumf %76, %77 : vector<2x64xf32>
    %79 = arith.truncf %78 : vector<2x64xf32> to vector<2x64xbf16>
    %c0_62 = arith.constant 0 : index
    %c128 = arith.constant 128 : index
    %80 = vector.load %arg13[%c0_62, %c128] : memref<2x256xbf16, #tpu.memory_space<vmem>>, vector<2x64xbf16>
    tpu.vector_store %arg13[%c0_62, %c128], %79 {strides = array<i32>} : memref<2x256xbf16, #tpu.memory_space<vmem>>, vector<2x64xbf16>,
    %c3 = arith.constant 3 : index
    %c0_63 = arith.constant 0 : index
    %c0_64 = arith.constant 0 : index
    %81 = vector.load %arg1[%c3, %c0_63, %c0_64] : memref<4x2x64xbf16, #tpu.memory_space<vmem>>, vector<1x2x64xbf16>
    %82 = vector.shape_cast %81 : vector<1x2x64xbf16> to vector<2x64xbf16>
    %c0_65 = arith.constant 0 : index
    %c0_66 = arith.constant 0 : index
    %83 = vector.load %arg2[%c0_65, %c0_66] : memref<64x32xbf16, #tpu.memory_space<vmem>>, vector<64x32xbf16>
    %cst_67 = arith.constant dense<0.000000e+00> : vector<2x32xf32>
    %84 = tpu.matmul %82, %83, %cst_67 {dimension_numbers = #tpu.dot_dimension_numbers<[1], [0], [0], [1], [0, 0, 1, 1], [], []>} : vector<2x64xbf16>, vector<64x32xbf16>, vector<2x32xf32> -> vector<2x32xf32>
    %c0_68 = arith.constant 0 : index
    %c0_69 = arith.constant 0 : index
    %85 = vector.load %arg3[%c0_68, %c0_69] : memref<1x32xf32, #tpu.memory_space<vmem>>, vector<1x32xf32>
    %86 = vector.broadcast %85 : vector<1x32xf32> to vector<2x32xf32>
    %87 = arith.addf %84, %86 : vector<2x32xf32>
    %cst_70 = arith.constant 0.000000e+00 : f32
    %88 = vector.broadcast %cst_70 : f32 to vector<2x32xf32>
    %89 = arith.maximumf %87, %88 : vector<2x32xf32>
    %90 = arith.truncf %89 : vector<2x32xf32> to vector<2x32xbf16>
    %c0_71 = arith.constant 0 : index
    %c0_72 = arith.constant 0 : index
    %91 = vector.load %arg4[%c0_71, %c0_72] : memref<32x64xbf16, #tpu.memory_space<vmem>>, vector<32x64xbf16>
    %cst_73 = arith.constant dense<0.000000e+00> : vector<2x64xf32>
    %92 = tpu.matmul %90, %91, %cst_73 {dimension_numbers = #tpu.dot_dimension_numbers<[1], [0], [0], [1], [0, 0, 1, 1], [], []>} : vector<2x32xbf16>, vector<32x64xbf16>, vector<2x64xf32> -> vector<2x64xf32>
    %c0_74 = arith.constant 0 : index
    %c0_75 = arith.constant 0 : index
    %93 = vector.load %arg5[%c0_74, %c0_75] : memref<1x64xf32, #tpu.memory_space<vmem>>, vector<1x64xf32>
    %94 = vector.broadcast %93 : vector<1x64xf32> to vector<2x64xf32>
    %95 = arith.addf %92, %94 : vector<2x64xf32>
    %cst_76 = arith.constant 0.000000e+00 : f32
    %96 = vector.broadcast %cst_76 : f32 to vector<2x64xf32>
    %97 = arith.maximumf %95, %96 : vector<2x64xf32>
    %98 = arith.truncf %97 : vector<2x64xf32> to vector<2x64xbf16>
    %c0_77 = arith.constant 0 : index
    %c0_78 = arith.constant 0 : index
    %99 = vector.load %arg6[%c0_77, %c0_78] : memref<64x64xbf16, #tpu.memory_space<vmem>>, vector<64x64xbf16>
    %cst_79 = arith.constant dense<0.000000e+00> : vector<2x64xf32>
    %100 = tpu.matmul %98, %99, %cst_79 {dimension_numbers = #tpu.dot_dimension_numbers<[1], [0], [0], [1], [0, 0, 1, 1], [], []>} : vector<2x64xbf16>, vector<64x64xbf16>, vector<2x64xf32> -> vector<2x64xf32>
    %c0_80 = arith.constant 0 : index
    %c0_81 = arith.constant 0 : index
    %101 = vector.load %arg7[%c0_80, %c0_81] : memref<1x64xf32, #tpu.memory_space<vmem>>, vector<1x64xf32>
    %102 = vector.broadcast %101 : vector<1x64xf32> to vector<2x64xf32>
    %103 = arith.addf %100, %102 : vector<2x64xf32>
    %cst_82 = arith.constant 0.000000e+00 : f32
    %104 = vector.broadcast %cst_82 : f32 to vector<2x64xf32>
    %105 = arith.maximumf %103, %104 : vector<2x64xf32>
    %106 = arith.truncf %105 : vector<2x64xf32> to vector<2x64xbf16>
    %c0_83 = arith.constant 0 : index
    %c192 = arith.constant 192 : index
    %107 = vector.load %arg13[%c0_83, %c192] : memref<2x256xbf16, #tpu.memory_space<vmem>>, vector<2x64xbf16>
    tpu.vector_store %arg13[%c0_83, %c192], %106 {strides = array<i32>} : memref<2x256xbf16, #tpu.memory_space<vmem>>, vector<2x64xbf16>,
    %c0_84 = arith.constant 0 : index
    %c0_85 = arith.constant 0 : index
    %108 = vector.load %arg13[%c0_84, %c0_85] : memref<2x256xbf16, #tpu.memory_space<vmem>>, vector<2x256xbf16>
    %c0_86 = arith.constant 0 : index
    %c0_87 = arith.constant 0 : index
    %109 = vector.load %arg8[%c0_86, %c0_87] : memref<256x512xbf16, #tpu.memory_space<vmem>>, vector<256x512xbf16>
    %cst_88 = arith.constant dense<0.000000e+00> : vector<2x512xf32>
    %110 = tpu.matmul %108, %109, %cst_88 {dimension_numbers = #tpu.dot_dimension_numbers<[1], [0], [0], [1], [0, 0, 1, 1], [], []>} : vector<2x256xbf16>, vector<256x512xbf16>, vector<2x512xf32> -> vector<2x512xf32>
    %c0_89 = arith.constant 0 : index
    %c0_90 = arith.constant 0 : index
    %111 = vector.load %arg9[%c0_89, %c0_90] : memref<1x512xf32, #tpu.memory_space<vmem>>, vector<1x512xf32>
    %112 = vector.broadcast %111 : vector<1x512xf32> to vector<2x512xf32>
    %113 = arith.addf %110, %112 : vector<2x512xf32>
    %cst_91 = arith.constant 0.000000e+00 : f32
    %114 = vector.broadcast %cst_91 : f32 to vector<2x512xf32>
    %115 = arith.maximumf %113, %114 : vector<2x512xf32>
    %116 = arith.truncf %115 : vector<2x512xf32> to vector<2x512xbf16>
    %c0_92 = arith.constant 0 : index
    %c0_93 = arith.constant 0 : index
    %117 = vector.load %arg10[%c0_92, %c0_93] : memref<512x128xbf16, #tpu.memory_space<vmem>>, vector<512x128xbf16>
    %cst_94 = arith.constant dense<0.000000e+00> : vector<2x128xf32>
    %118 = tpu.matmul %116, %117, %cst_94 {dimension_numbers = #tpu.dot_dimension_numbers<[1], [0], [0], [1], [0, 0, 1, 1], [], []>} : vector<2x512xbf16>, vector<512x128xbf16>, vector<2x128xf32> -> vector<2x128xf32>
    %c0_95 = arith.constant 0 : index
    %c0_96 = arith.constant 0 : index
    %119 = vector.load %arg11[%c0_95, %c0_96] : memref<1x128xf32, #tpu.memory_space<vmem>>, vector<1x128xf32>
    %120 = vector.broadcast %119 : vector<1x128xf32> to vector<2x128xf32>
    %121 = arith.addf %118, %120 : vector<2x128xf32>
    %c0_97 = arith.constant 0 : index
    %c0_98 = arith.constant 0 : index
    %122 = vector.load %arg12[%c0_97, %c0_98] : memref<2x128xf32, #tpu.memory_space<vmem>>, vector<2x128xf32>
    tpu.vector_store %arg12[%c0_97, %c0_98], %121 {strides = array<i32>} : memref<2x128xf32, #tpu.memory_space<vmem>>, vector<2x128xf32>,
    return
  }
  func.func @transform_0(%arg0: i32) -> (i32, i32, i32) {
    %c0_i32 = arith.constant 0 : i32
    %c0_i32_0 = arith.constant 0 : i32
    %c0_i32_1 = arith.constant 0 : i32
    return %c0_i32, %arg0, %c0_i32_0 : i32, i32, i32
  }
  func.func @transform_1(%arg0: i32) -> (i32, i32) {
    %c0_i32 = arith.constant 0 : i32
    %c0_i32_0 = arith.constant 0 : i32
    %c0_i32_1 = arith.constant 0 : i32
    return %c0_i32, %c0_i32_0 : i32, i32
  }
  func.func @transform_2(%arg0: i32) -> (i32, i32) {
    %c0_i32 = arith.constant 0 : i32
    %c0_i32_0 = arith.constant 0 : i32
    %c0_i32_1 = arith.constant 0 : i32
    return %c0_i32, %c0_i32_0 : i32, i32
  }
  func.func @transform_3(%arg0: i32) -> (i32, i32) {
    %c0_i32 = arith.constant 0 : i32
    %c0_i32_0 = arith.constant 0 : i32
    %c0_i32_1 = arith.constant 0 : i32
    return %c0_i32, %c0_i32_0 : i32, i32
  }
  func.func @transform_4(%arg0: i32) -> (i32, i32) {
    %c0_i32 = arith.constant 0 : i32
    %c0_i32_0 = arith.constant 0 : i32
    %c0_i32_1 = arith.constant 0 : i32
    return %c0_i32, %c0_i32_0 : i32, i32
  }
  func.func @transform_5(%arg0: i32) -> (i32, i32) {
    %c0_i32 = arith.constant 0 : i32
    %c0_i32_0 = arith.constant 0 : i32
    %c0_i32_1 = arith.constant 0 : i32
    return %c0_i32, %c0_i32_0 : i32, i32
  }
  func.func @transform_6(%arg0: i32) -> (i32, i32) {
    %c0_i32 = arith.constant 0 : i32
    %c0_i32_0 = arith.constant 0 : i32
    %c0_i32_1 = arith.constant 0 : i32
    return %c0_i32, %c0_i32_0 : i32, i32
  }
  func.func @transform_7(%arg0: i32) -> (i32, i32) {
    %c0_i32 = arith.constant 0 : i32
    %c0_i32_0 = arith.constant 0 : i32
    %c0_i32_1 = arith.constant 0 : i32
    return %c0_i32, %c0_i32_0 : i32, i32
  }
  func.func @transform_8(%arg0: i32) -> (i32, i32) {
    %c0_i32 = arith.constant 0 : i32
    %c0_i32_0 = arith.constant 0 : i32
    %c0_i32_1 = arith.constant 0 : i32
    return %c0_i32, %c0_i32_0 : i32, i32
  }
  func.func @transform_9(%arg0: i32) -> (i32, i32) {
    %c0_i32 = arith.constant 0 : i32
    %c0_i32_0 = arith.constant 0 : i32
    %c0_i32_1 = arith.constant 0 : i32
    return %c0_i32, %c0_i32_0 : i32, i32
  }
  func.func @transform_10(%arg0: i32) -> (i32, i32) {
    %c0_i32 = arith.constant 0 : i32
    %c0_i32_0 = arith.constant 0 : i32
    %c0_i32_1 = arith.constant 0 : i32
    return %c0_i32, %c0_i32_0 : i32, i32
  }
  func.func @transform_11(%arg0: i32) -> (i32, i32) {
    %c0_i32 = arith.constant 0 : i32
    %c0_i32_0 = arith.constant 0 : i32
    return %arg0, %c0_i32 : i32, i32
  }
}

</mosaic_0001>

<bundles_post_ra>
// kernel: tpu_custom_call.1
= control target key start
LH: loop header
LB: loop body
LE: loop exit
PB: predicated region body
PF: predicated region fallthrough
CT: control target
= control target key end

     0   :  { %16 = vsyncpa [#allocation4], 0  ;;  %s2702_s0 = inlined_call_operand.vmem [shape: bf16[4,2,64], index: 0, kind: input, shape index: {}]   ;;  %s2703_s1 = inlined_call_operand.vmem [shape: bf16[64,32], index: 1, kind: input, shape index: {}]   ;;  %s2704_s2 = inlined_call_operand.hbm [shape: f32[1,32], index: 2, kind: input, shape index: {}]   ;;  %s2705_s3 = inlined_call_operand.vmem [shape: bf16[32,64], index: 3, kind: input, shape index: {}]   ;;  %s2706_s4 = inlined_call_operand.hbm [shape: f32[1,64], index: 4, kind: input, shape index: {}]   ;;  %s2707_s5 = inlined_call_operand.vmem [shape: bf16[64,64], index: 5, kind: input, shape index: {}]   ;;  %s2708_s6 = inlined_call_operand.vmem [shape: f32[1,64], index: 6, kind: input, shape index: {}]   ;;  %s2709_s7 = inlined_call_operand.hbm [shape: bf16[256,512], index: 7, kind: input, shape index: {}]   ;;  %s2710_s8 = inlined_call_operand.hbm [shape: f32[1,512], index: 8, kind: input, shape index: {}]   ;;  %s2711_s9 = inlined_call_operand.hbm [shape: bf16[512,128], index: 9, kind: input, shape index: {}]   ;;  %s2712_s10 = inlined_call_operand.vmem [shape: f32[1,128], index: 10, kind: input, shape index: {}]   ;;  %s2713_s11 = inlined_call_operand.hbm [shape: f32[2,128], index: 11, kind: output, shape index: {}]  }
   0x1   :  { %17 = vsyncpa [#allocation7], 0 }
   0x2   :  { %18 = vsyncpa [#allocation10], 0  ;;  %s42_s19 = sshll.u32 %s2706_s4, 4  ;;  %s43_s19 = int_to_ptr.hbm [resolvable:$true] %s42_s19 }
   0x3   :  { %19 = vsyncpa [#allocation5], 0  ;;  %s2445_s20 = smov [#allocation6]   ;;  %s70_s24 = sshll.u32 %s2710_s8, 4  ;;  %s71_s24 = int_to_ptr.hbm [resolvable:$true] %s70_s24 }
   0x4   :  { %s44_s21 = sshll.u32 %s2445_s20, 4  ;;  %s2446_s25 = smov [#allocation9]   ;;  %s45_s21 = int_to_ptr.vmem [resolvable:$true] %s44_s21 }
   0x5   :  { %47 = dma.hbm_to_vmem [thread:$0]  %s43_s19, 16, %s45_s21, [#allocation7]  }
   0x6   :  { %s72_s26 = sshll.u32 %s2446_s25, 4  ;;  %s29_s29 = sshll.u32 %s2704_s2, 4  ;;  %s73_s26 = int_to_ptr.vmem [resolvable:$true] %s72_s26  ;;  %s30_s29 = int_to_ptr.hbm [resolvable:$true] %s29_s29 }
   0x7   :  { %75 = dma.hbm_to_vmem [thread:$0]  %s71_s24, 64, %s73_s26, [#allocation10]  }
   0x8   :  { %s56_s12 = sshll.u32 %s2709_s7, 4  ;;  %s2447_s13 = smov [#allocation3]   ;;  %s57_s12 = int_to_ptr.hbm [resolvable:$true] %s56_s12 }
   0x9   :  { %s31_s14 = sshll.u32 %s2447_s13, 4  ;;  %s2448_s8 = smov [#allocation8]   ;;  %s32_s14 = int_to_ptr.vmem [resolvable:$true] %s31_s14 }
   0xa   :  { %34 = dma.hbm_to_vmem [thread:$0]  %s30_s29, 16, %s32_s14, [#allocation4]  }
   0xb   :  { %s58_s15 = sshll.u32 %s2448_s8, 4  ;;  %s2449_s16 = smov 256   ;;  %s59_s15 = int_to_ptr.vmem [resolvable:$true] %s58_s15 }
   0xc   :  { %s2450_s17 = smov 16   ;;  %s80_s19 = sshll.u32 %s2711_s9, 4  ;;  %s81_s19 = int_to_ptr.hbm [resolvable:$true] %s80_s19 }
   0xd   :  { %64 = dma.hbm_to_vmem [thread:$0]  %s57_s12, 8192, %s59_s15, [#allocation7], %s2449_s16, %s2449_s16, %s2450_s17  }
   0xe   :  { %s2451_s20 = smov [#allocation11]   ;;  %s2452_s7 = smov 64  }
   0xf   :  { %s82_s21 = sshll.u32 %s2451_s20, 4  ;;  %s2453_s22 = smov 4   ;;  %s83_s21 = int_to_ptr.vmem [resolvable:$true] %s82_s21 }
  0x10   :  { %88 = dma.hbm_to_vmem [thread:$0]  %s81_s19, 4096, %s83_s21, [#allocation10], %s2452_s7, %s2452_s7, %s2453_s22  }
  0x11   :  { %2437 = dma.done.wait [#allocation4], 16  }
  0x12   :  { %2438 = vsyncadd [#allocation4], 4294967280 }
  0x13   :  { %2439 = dma.done.wait [#allocation7], 8208  }
  0x14   :  { %2440 = vsyncadd [#allocation7], 4294959088 }
  0x15   :  { %2441 = dma.done.wait [#allocation10], 4160  }
  0x16   :  { %2442 = vsyncadd [#allocation10], 4294963136  ;;  %v2137_v0 = vld [vmem:[%s2703_s1 + $0x18] sm:$0xff]  ;;  %v2136_v2 = vld [vmem:[%s2703_s1 + $0x10] sm:$0xff]  ;;  %vm149_vm0 = vcmask 523264   ;;  %vm188_vm1 = vcmask 261120  }
  0x17   :  { %v2147_v1 = vld [vmem:[%s2703_s1 + $0x18] sm:$0xff]  ;;  %157 = vmatpush.bf16.msra.mxu0 %v2137_v0  ;;  %v2146_v3 = vld [vmem:[%s2703_s1 + $0x10] sm:$0xff]  ;;  %v2135_v4 = vld [vmem:[%s2703_s1 + $0x8] sm:$0xff]  ;;  %vm261_vm2 = vcmask 516096   ;;  %vm413_vm3 = vcmask 1040384   ;;  %vm421_vm4 = vcmask 1040896  }
  0x18   :  { %308 = vmatpush.bf16.msra.mxu3 %v2147_v1  ;;  %v2145_v5 = vld [vmem:[%s2703_s1 + $0x8] sm:$0xff]  ;;  %v2134_v6 = vld [vmem:[%s2703_s1] sm:$0xff]  ;;  %v2143_v14 = vld [vmem:[%s2707_s5 + $0x18] sm:$0xff]  ;;  %s2454_s23 = smov [#allocation12]   ;;  %s1563_s9 = sshll.u32 %s2713_s11, 4  ;;  %s1564_s9 = int_to_ptr.hbm [resolvable:$true] %s1563_s9 }
  0x19   :  { %v2144_v7 = vld [vmem:[%s2703_s1] sm:$0xff]  ;;  %v2139_v10 = vld [vmem:[%s2705_s3 + $0x8] sm:$0xff]  ;;  %250 = vmatpush.bf16.msra.mxu2 %v2143_v14  ;;  %v2142_v15 = vld [vmem:[%s2707_s5 + $0x10] sm:$0xff] }
  0x1a   :  { %v112_v8 = vld [vmem:[%s2702_s0] sm:$0x1]  ;;  %v1618_v9 = vld [vmem:[%s2702_s0 + $0x1] sm:$0x1]  ;;  %198 = vmatpush.bf16.msra.mxu1 %v2139_v10  ;;  %v2149_v12 = vld [vmem:[%s2705_s3 + $0x8] sm:$0xff] }
  0x1b   :  { %158 = vmatpush.bf16.msra.mxu0 %v2136_v2  ;;  %v2138_v11 = vld [vmem:[%s2705_s3] sm:$0xff]  ;;  %v2280_v16 = vld [vmem:[#allocation3] ss:$0 sm:$0xff]  ;;  %v2153_v30 = vld [vmem:[%s2707_s5 + $0x18] sm:$0xff] }
  0x1c   :  { %309 = vmatpush.bf16.msra.mxu3 %v2146_v3  ;;  %v2148_v13 = vld [vmem:[%s2705_s3] sm:$0xff]  ;;  %v2281_v22 = vld [vmem:[#allocation3] ss:$0 sm:$0xff]  ;;  %v2152_v31 = vld [vmem:[%s2707_s5 + $0x10] sm:$0xff] }
  0x1d   :  { %251 = vmatpush.bf16.msra.mxu2 %v2142_v15  ;;  %v2141_v28 = vld [vmem:[%s2707_s5 + $0x8] sm:$0xff]  ;;  %v2140_v29 = vld [vmem:[%s2707_s5] sm:$0xff]  ;;  %v2167_v34 = vld [vmem:[%s2703_s1 + $0x18] sm:$0xff] }
  0x1e   :  { %199 = vmatpush.bf16.msra.mxu1 %v2138_v11  ;;  %v2151_v32 = vld [vmem:[%s2707_s5 + $0x8] sm:$0xff]  ;;  %v2150_v33 = vld [vmem:[%s2707_s5] sm:$0xff]  ;;  %v2166_v35 = vld [vmem:[%s2703_s1 + $0x10] sm:$0xff] }
  0x1f   :  { %159 = vmatpush.bf16.msra.mxu0 %v2135_v4  ;;  %v2165_v36 = vld [vmem:[%s2703_s1 + $0x8] sm:$0xff]  ;;  %v2164_v39 = vld [vmem:[%s2703_s1] sm:$0xff]  ;;  %v2157_v43 = vld [vmem:[%s2703_s1 + $0x18] sm:$0xff] }
  0x20   :  { %310 = vmatpush.bf16.msra.mxu3 %v2145_v5  ;;  %v2282_v37 = vld [vmem:[#allocation6] ss:$0 sm:$0xff]  ;;  %v2156_v45 = vld [vmem:[%s2703_s1 + $0x10] sm:$0xff]  ;;  %v1706_v52 = vld [vmem:[%s2702_s0 + $0x3] sm:$0x1] }
  0x21   :  { %252 = vmatpush.bf16.msra.mxu2 %v2141_v28  ;;  %v2283_v46 = vld [vmem:[#allocation6] ss:$0 sm:$0xff]  ;;  %v2154_v54 = vld [vmem:[%s2703_s1] sm:$0xff]  ;;  %v2287_v15 = vld [vmem:[#allocation3] ss:$0 sm:$0xff] }
  0x22   :  { %348 = vmatpush.bf16.msrb.mxu1 %v2149_v12  ;;  %v2155_v53 = vld [vmem:[%s2703_s1 + $0x8] sm:$0xff]  ;;  %v1662_v55 = vld [vmem:[%s2702_s0 + $0x2] sm:$0x1]  ;;  %v2284_v58 = vld [vmem:[%s2708_s6] ss:$0 sm:$0xff]  ;;  %s1561_s0 = sshll.u32 %s2454_s23, 4  ;;  %s1562_s0 = int_to_ptr.vmem [resolvable:$true] %s1561_s0 }
  0x23   :  { %160 = vmatpush.bf16.msra.mxu0 %v2134_v6  ;;  %v2169_v56 = vld [vmem:[%s2705_s3 + $0x8] sm:$0xff]  ;;  %v2168_v57 = vld [vmem:[%s2705_s3] sm:$0xff]  ;;  %v2162_v28 = vld [vmem:[%s2707_s5 + $0x10] sm:$0xff] }
  0x24   :  { %311 = vmatpush.bf16.msra.mxu3 %v2144_v7  ;;  %v2285_v63 = vld [vmem:[%s2708_s6] ss:$0 sm:$0xff]  ;;  %v2159_v14 = vld [vmem:[%s2705_s3 + $0x8] sm:$0xff] }
  0x25   :  { %253 = vmatpush.bf16.msra.mxu2 %v2140_v29  ;;  %v2288_v29 = vld [vmem:[#allocation6] ss:$0 sm:$0xff] }
  0x26   :  { %1591 = vmatmul.msk.bf16.vlgmr.msra.gmra.mxu0 %vm149_vm0, %v112_v8  ;;  %349 = vmatpush.bf16.msrb.mxu1 %v2148_v13  ;;  %v2286_v8 = vld [vmem:[#allocation3] ss:$0 sm:$0xff] }
  0x27   :  { %1635 = vmatmul.msk.bf16.vlgmr.msra.gmra.mxu3 %vm149_vm0, %v1618_v9  ;;  %400 = vmatpush.bf16.msrb.mxu0 %v2153_v30 }
  0x28   :  { %508 = vmatpush.bf16.msrb.mxu3 %v2159_v14 }
  0x29   :  { %468 = vmatpush.bf16.msrb.mxu2 %v2157_v43  ;;  %v1864_v43 = vld [vmem:[#allocation8 + $0xe0] sm:$0xf] }
  0x2b   :  { %401 = vmatpush.bf16.msrb.mxu0 %v2152_v31 }
  0x2d   :  { %469 = vmatpush.bf16.msrb.mxu2 %v2156_v45  ;;  %v1992_v45 = vld [vmem:[#allocation8 + $0x1e0] sm:$0xf] }
  0x2f   :  { %402 = vmatpush.bf16.msrb.mxu0 %v2151_v32 }
  0x31   :  { %470 = vmatpush.bf16.msrb.mxu2 %v2155_v53  ;;  %v1994_v53 = vld [vmem:[#allocation8 + $0x1f0] sm:$0xf0] }
  0x33   :  { %403 = vmatpush.bf16.msrb.mxu0 %v2150_v33 }
  0x35   :  { %471 = vmatpush.bf16.msrb.mxu2 %v2154_v54  ;;  %v1848_v54 = vld [vmem:[#allocation8 + $0xc0] sm:$0xf] }
  0x37   :  { %617 = vmatpush.bf16.msra.mxu0 %v2167_v34 }
  0x3b   :  { %618 = vmatpush.bf16.msra.mxu0 %v2166_v35  ;;  %v2161_v35 = vld [vmem:[%s2707_s5 + $0x8] sm:$0xff] }
  0x3f   :  { %619 = vmatpush.bf16.msra.mxu0 %v2165_v36  ;;  %v2160_v36 = vld [vmem:[%s2707_s5] sm:$0xff] }
  0x43   :  { %620 = vmatpush.bf16.msra.mxu0 %v2164_v39 }
  0xa3   :  { %v162_v17 = vpop.f32.mrf.mxu0 }
  0xa4   :  { %v163_v18 = vadd.f32 %v2280_v16, %v162_v17  ;;  %v2158_v16 = vld [vmem:[%s2705_s3] sm:$0xff]  ;;  %v2173_v17 = vld [vmem:[%s2707_s5 + $0x18] sm:$0xff] }
  0xa5   :  { %509 = vmatpush.bf16.msrb.mxu3 %v2158_v16 }
  0xa6   :  { %v166_v19 = vmax.f32 %v163_v18, 0.0 }
  0xa8   :  { %v167_v20 = vpack.c.bf16 %v166_v19, %v166_v19 }
  0xa9   :  { %709 = vmatpush.bf16.msra.mxu3 %v2173_v17 }
  0xaa   :  { %v313_v21 = vpop.f32.mrf.mxu3  ;;  %1600 = vmatmul.msk.bf16.vlgmr.msra.gmra.mxu1 %vm188_vm1, %v167_v20  ;;  %v2172_v20 = vld [vmem:[%s2707_s5 + $0x10] sm:$0xff] }
  0xab   :  { %v164_v23 = vpop.f32.mrf.mxu0  ;;  %v314_v24 = vadd.f32 %v2281_v22, %v313_v21 }
  0xac   :  { %v2171_v23 = vld [vmem:[%s2707_s5 + $0x8] sm:$0xff] }
  0xad   :  { %v317_v26 = vmax.f32 %v314_v24, 0.0  ;;  %710 = vmatpush.bf16.msra.mxu3 %v2172_v20 }
  0xaf   :  { %v318_v27 = vpack.c.bf16 %v317_v26, %v317_v26  ;;  %v2170_v26 = vld [vmem:[%s2707_s5] sm:$0xff] }
  0xb1   :  { %711 = vmatpush.bf16.msra.mxu3 %v2171_v23  ;;  %v1816_v23 = vld [vmem:[#allocation8 + $0x80] sm:$0xf] }
  0xb2   :  { %v315_v25 = vpop.f32.mrf.mxu3 }
  0xb5   :  { %712 = vmatpush.bf16.msra.mxu3 %v2170_v26 }
  0xba   :  { %1644 = vmatmul.msk.bf16.vlgmr.msrb.gmra.mxu1 %vm188_vm1, %v318_v27  ;;  %v2163_v27 = vld [vmem:[%s2707_s5 + $0x18] sm:$0xff] }
  0xbb   :  { %560 = vmatpush.bf16.msra.mxu1 %v2163_v27  ;;  %v2224_v27 = vld [vmem:[#allocation8 + $0x18c] sm:$0xf0] }
  0xbf   :  { %561 = vmatpush.bf16.msra.mxu1 %v2162_v28  ;;  %v2190_v28 = vld [vmem:[#allocation8 + $0x84] sm:$0xf] }
  0xc3   :  { %562 = vmatpush.bf16.msra.mxu1 %v2161_v35 }
  0xc7   :  { %563 = vmatpush.bf16.msra.mxu1 %v2160_v36  ;;  %v2188_v36 = vld [vmem:[#allocation8 + $0x6c] sm:$0xf0] }
 0x127   :  { %v201_v38 = vpop.f32.mrf.mxu1 }
 0x128   :  { %v202_v40 = vadd.f32 %v2282_v37, %v201_v38  ;;  %v2289_v37 = vld [vmem:[#allocation6] ss:$0 sm:$0xff] }
 0x12a   :  { %v205_v41 = vmax.f32 %v202_v40, 0.0 }
 0x12c   :  { %v206_v42 = vpack.c.bf16 %v205_v41, %v205_v41 }
 0x12e   :  { %1617 = vmatmul.msk.bf16.vlgmr.msra.gmra.mxu2 %vm149_vm0, %v206_v42 }
 0x12f   :  { %v203_v44 = vpop.f32.mrf.mxu1  ;;  %657 = vmatpush.bf16.msra.mxu2 %v2169_v56  ;;  %v2200_v56 = vld [vmem:[#allocation8 + $0xcc] sm:$0xf0] }
 0x130   :  { %v2204_v44 = vld [vmem:[#allocation8 + $0xec] sm:$0xf0] }
 0x133   :  { %658 = vmatpush.bf16.msra.mxu2 %v2168_v57  ;;  %v1976_v57 = vld [vmem:[#allocation8 + $0x1c0] sm:$0xf] }
 0x137   :  { %v351_v47 = vpop.f32.mrf.mxu1 }
 0x138   :  { %v352_v48 = vadd.f32 %v2283_v46, %v351_v47  ;;  %v1865_v46 = vor.u32 %v2204_v44, %v1864_v43  ;;  %v2236_v47 = vld [vmem:[#allocation8 + $0x1ec] sm:$0xf0]  ;;  %v2218_v43 = vld [vmem:[#allocation8 + $0x164] sm:$0xf] }
 0x13a   :  { %v355_v49 = vmax.f32 %v352_v48, 0.0  ;;  %v2202_v48 = vld [vmem:[#allocation8 + $0xe4] sm:$0xf]  ;;  %1131 = vmatpush.bf16.msrb.mxu1 %v1865_v46  ;;  %v1784_v46 = vld [vmem:[#allocation8 + $0x40] sm:$0xf] }
 0x13c   :  { %v356_v50 = vpack.c.bf16 %v355_v49, %v355_v49  ;;  %v1866_v49 = vld [vmem:[#allocation8 + $0xf0] sm:$0xf0] }
 0x13e   :  { %1661 = vmatmul.msk.bf16.vlgmr.msrb.gmra.mxu0 %vm149_vm0, %v356_v50  ;;  %1679 = vmatmul.msk.bf16.vlgmr.msrb.gmra.mxu2 %vm149_vm0, %v1662_v55  ;;  %v1993_v50 = vor.u32 %v2236_v47, %v1992_v45  ;;  %v1930_v45 = vld [vmem:[#allocation8 + $0x170] sm:$0xf0]  ;;  %v2184_v47 = vld [vmem:[#allocation8 + $0x4c] sm:$0xf0] }
 0x13f   :  { %v353_v51 = vpop.f32.mrf.mxu1 }
 0x140   :  { %v1869_v51 = vor.u32 %v2202_v48, %v1866_v49  ;;  %1144 = vmatpush.bf16.msrb.mxu0 %v1993_v50  ;;  %v1933_v48 = vor.u32 %v2218_v43, %v1930_v45  ;;  %v1912_v49 = vld [vmem:[#allocation8 + $0x140] sm:$0xf]  ;;  %v2216_v50 = vld [vmem:[#allocation8 + $0x14c] sm:$0xf0]  ;;  %v2231_v45 = vld [vmem:[#allocation8 + $0x1cc] sm:$0xf] }
 0x142   :  { %1157 = vmatpush.bf16.msrb.mxu2 %v1869_v51  ;;  %v2182_v51 = vld [vmem:[#allocation8 + $0x44] sm:$0xf] }
 0x14e   :  { %1723 = vmatmul.msk.bf16.vlgmr.msra.gmra.mxu0 %vm149_vm0, %v1706_v52  ;;  %v2234_v52 = vld [vmem:[#allocation8 + $0x1e4] sm:$0xf] }
 0x14f   :  { %v1997_v55 = vor.u32 %v2234_v52, %v1994_v53  ;;  %v1785_v52 = vor.u32 %v2184_v47, %v1784_v46  ;;  %v1786_v53 = vld [vmem:[#allocation8 + $0x50] sm:$0xf0]  ;;  %v1986_v46 = vld [vmem:[#allocation8 + $0x1d8] sm:$0xf0] }
 0x1b1   :  { %v255_v59 = vpop.f32.mrf.mxu2 }
 0x1b2   :  { %v256_v60 = vadd.f32 %v2284_v58, %v255_v59  ;;  %v2232_v58 = vld [vmem:[#allocation8 + $0x1cc] sm:$0xf0]  ;;  %v1849_v59 = vor.u32 %v2200_v56, %v1848_v54  ;;  %v2214_v54 = vld [vmem:[#allocation8 + $0x144] sm:$0xf]  ;;  %v1913_v56 = vor.u32 %v2216_v50, %v1912_v49  ;;  %v1840_v49 = vld [vmem:[#allocation8 + $0xa8] sm:$0xf] }
 0x1b3   :  { %v2197_v50 = vld [vmem:[#allocation8 + $0xb4] sm:$0xf0] }
 0x1b4   :  { %v259_v61 = vmax.f32 %v256_v60, 0.0  ;;  %v1977_v60 = vor.u32 %v2232_v58, %v1976_v57  ;;  %1132 = vmatpush.bf16.msrb.mxu1 %v1849_v59  ;;  %v1789_v57 = vor.u32 %v2182_v51, %v1786_v53  ;;  %v1768_v58 = vld [vmem:[#allocation8 + $0x20] sm:$0xf]  ;;  %v2180_v59 = vld [vmem:[#allocation8 + $0x2c] sm:$0xf0] }
 0x1b5   :  { %v1968_v51 = vld [vmem:[#allocation8 + $0x1a8] sm:$0xf]  ;;  %v2229_v53 = vld [vmem:[#allocation8 + $0x1b4] sm:$0xf0] }
 0x1b6   :  { %v260_v62 = vpack.c.bf16 %v259_v61, %v259_v61  ;;  %v2198_v61 = vld [vmem:[#allocation8 + $0xc4] sm:$0xf]  ;;  %1145 = vmatpush.bf16.msrb.mxu0 %v1977_v60  ;;  %v1896_v60 = vld [vmem:[#allocation8 + $0x120] sm:$0xf] }
 0x1b8   :  { %262 = vst.msk [vmem:[#allocation2] sm:$0x1] %vm261_vm2, %v260_v62  ;;  %v1850_v62 = vld [vmem:[#allocation8 + $0xd0] sm:$0xf0] }
 0x1b9   :  { %v257_v0 = vpop.f32.mrf.mxu2 }
 0x1ba   :  { %v1853_v0 = vor.u32 %v2198_v61, %v1850_v62  ;;  %v2212_v62 = vld [vmem:[#allocation8 + $0x12c] sm:$0xf0] }
 0x1bb   :  { %v405_v1 = vpop.f32.mrf.mxu0 }
 0x1bc   :  { %v406_v2 = vadd.f32 %v2285_v63, %v405_v1  ;;  %v2230_v63 = vld [vmem:[#allocation8 + $0x1c4] sm:$0xf]  ;;  %v1978_v1 = vld [vmem:[#allocation8 + $0x1d0] sm:$0xf0]  ;;  %1158 = vmatpush.bf16.msrb.mxu2 %v1853_v0 }
 0x1bd   :  { %v1770_v0 = vld [vmem:[#allocation8 + $0x30] sm:$0xf0] }
 0x1be   :  { %v409_v3 = vmax.f32 %v406_v2, 0.0  ;;  %v1832_v2 = vld [vmem:[#allocation8 + $0xa0] sm:$0xf] }
 0x1c0   :  { %v410_v4 = vpack.c.bf16 %v409_v3, %v409_v3  ;;  %v2196_v3 = vld [vmem:[#allocation8 + $0xac] sm:$0xf0] }
 0x1c1   :  { %v473_v18 = vpop.f32.mrf.mxu2 }
 0x1c2   :  { %v412_v5 = vrot.slane %v410_v4, 3  ;;  %v474_v19 = vadd.f32 %v2287_v15, %v473_v18  ;;  %v2290_v15 = vld [vmem:[%s2708_s6] ss:$0 sm:$0xff] }
 0x1c3   :  { %v407_v6 = vpop.f32.mrf.mxu0 }
 0x1c4   :  { %v416_v7 = vsel %vm413_vm3, %v410_v4, %v412_v5  ;;  %v477_v21 = vmax.f32 %v474_v19, 0.0  ;;  %v1981_v4 = vor.u32 %v2230_v63, %v1978_v1  ;;  %v1960_v5 = vld [vmem:[#allocation8 + $0x1a0] sm:$0xf]  ;;  %v2228_v6 = vld [vmem:[#allocation8 + $0x1ac] sm:$0xf0] }
 0x1c5   :  { %418 = vrot.lane.b32.xlu0 %v416_v7, %s2452_s7  ;;  %v2194_v7 = vld [vmem:[#allocation8 + $0xa4] sm:$0xf] }
 0x1c6   :  { %v478_v22 = vpack.c.bf16 %v477_v21, %v477_v21  ;;  %v2178_v63 = vld [vmem:[#allocation8 + $0x24] sm:$0xf] }
 0x1c7   :  { %v2210_v1 = vld [vmem:[#allocation8 + $0x124] sm:$0xf] }
 0x1c8   :  { %1688 = vmatmul.msk.bf16.vlgmr.msrb.gmra.mxu3 %vm188_vm1, %v478_v22 }
 0x1c9   :  { %v475_v24 = vpop.f32.mrf.mxu2  ;;  %1170 = vmatpush.bf16.msrb.mxu3 %v1997_v55  ;;  %v1914_v55 = vld [vmem:[#allocation8 + $0x150] sm:$0xf0] }
 0x1ca   :  { %v2192_v24 = vld [vmem:[#allocation8 + $0x8c] sm:$0xf0]  ;;  %v1917_v61 = vor.u32 %v2214_v54, %v1914_v55  ;;  %v2195_v54 = vld [vmem:[#allocation8 + $0xac] sm:$0xf]  ;;  %v1842_v55 = vld [vmem:[#allocation8 + $0xb8] sm:$0xf0] }
 0x1cb   :  { %v622_v9 = vpop.f32.mrf.mxu0  ;;  %v1817_v26 = vor.u32 %v2192_v24, %v1816_v23  ;;  %v1882_v23 = vld [vmem:[#allocation8 + $0x110] sm:$0xf0]  ;;  %v1872_v24 = vld [vmem:[#allocation8 + $0xe8] sm:$0xf] }
 0x1cc   :  { %v623_v10 = vadd.f32 %v2286_v8, %v622_v9  ;;  %v1833_v8 = vor.u32 %v2196_v3, %v1832_v2  ;;  %v1834_v9 = vld [vmem:[#allocation8 + $0xb0] sm:$0xf0]  ;;  %v1769_v3 = vor.u32 %v2180_v59, %v1768_v58  ;;  %v2227_v58 = vld [vmem:[#allocation8 + $0x1ac] sm:$0xf]  ;;  %v1970_v59 = vld [vmem:[#allocation8 + $0x1b8] sm:$0xf0] }
 0x1cd   :  { %1171 = vmatpush.bf16.msrb.mxu3 %v1981_v4  ;;  %v1898_v2 = vld [vmem:[#allocation8 + $0x130] sm:$0xf0]  ;;  %v1897_v4 = vor.u32 %v2212_v62, %v1896_v60  ;;  %v1824_v60 = vld [vmem:[#allocation8 + $0x88] sm:$0xf]  ;;  %v2193_v62 = vld [vmem:[#allocation8 + $0x94] sm:$0xf0] }
 0x1ce   :  { %v626_v11 = vmax.f32 %v623_v10, 0.0  ;;  %v2226_v10 = vld [vmem:[#allocation8 + $0x1a4] sm:$0xf]  ;;  %1133 = vmatpush.bf16.msrb.mxu1 %v1833_v8 }
 0x1d0   :  { %v627_v12 = vpack.c.bf16 %v626_v11, %v626_v11  ;;  %v1962_v11 = vld [vmem:[#allocation8 + $0x1b0] sm:$0xf0] }
 0x1d1   :  { %v1965_v14 = vor.u32 %v2226_v10, %v1962_v11 }
 0x1d2   :  { %1732 = vmatmul.msk.bf16.vlgmr.msra.gmra.mxu2 %vm188_vm1, %v627_v12  ;;  %v1961_v12 = vor.u32 %v2228_v6, %v1960_v5  ;;  %1134 = vmatpush.bf16.msrb.mxu1 %v1817_v26  ;;  %v1773_v5 = vor.u32 %v2178_v63, %v1770_v0  ;;  %v1901_v6 = vor.u32 %v2210_v1, %v1898_v2  ;;  %v2205_v26 = vld [vmem:[#allocation8 + $0xf4] sm:$0xf0]  ;;  %v1952_v63 = vld [vmem:[#allocation8 + $0x188] sm:$0xf]  ;;  %v2191_v1 = vld [vmem:[#allocation8 + $0x8c] sm:$0xf] }
 0x1d3   :  { %v624_v13 = vpop.f32.mrf.mxu0  ;;  %1172 = vmatpush.bf16.msrb.mxu3 %v1965_v14  ;;  %v2176_v14 = vld [vmem:[#allocation8 + $0xc] sm:$0xf0]  ;;  %v2225_v0 = vld [vmem:[#allocation8 + $0x194] sm:$0xf0]  ;;  %v1826_v2 = vld [vmem:[#allocation8 + $0x98] sm:$0xf0] }
 0x1d4   :  { %v1837_v13 = vor.u32 %v2194_v7, %v1834_v9  ;;  %1146 = vmatpush.bf16.msrb.mxu0 %v1961_v12  ;;  %v2291_v7 = vld [vmem:[%s2708_s6] ss:$0 sm:$0xff] }
 0x1d6   :  { %1159 = vmatpush.bf16.msrb.mxu2 %v1837_v13  ;;  %v1752_v13 = vld [vmem:[#allocation8] sm:$0xf] }
 0x237   :  { %v419_v25 = vpop.permute.xlu0 %418 }
 0x238   :  { %422 = vst.msk [vmem:[#allocation2] sm:$0x1] %vm421_vm4, %v419_v25  ;;  %v1944_v25 = vld [vmem:[#allocation8 + $0x180] sm:$0xf] }
 0x24b   :  { %v511_v38 = vpop.f32.mrf.mxu3 }
 0x24c   :  { %v512_v39 = vadd.f32 %v2289_v37, %v511_v38  ;;  %v1928_v37 = vld [vmem:[#allocation8 + $0x160] sm:$0xf]  ;;  %v2220_v38 = vld [vmem:[#allocation8 + $0x16c] sm:$0xf0] }
 0x24e   :  { %v515_v40 = vmax.f32 %v512_v39, 0.0 }
 0x250   :  { %v516_v41 = vpack.c.bf16 %v515_v40, %v515_v40  ;;  %v1929_v40 = vor.u32 %v2220_v38, %v1928_v37  ;;  %v2201_v37 = vld [vmem:[#allocation8 + $0xd4] sm:$0xf0] }
 0x252   :  { %1705 = vmatmul.msk.bf16.vlgmr.msra.gmra.mxu1 %vm149_vm0, %v516_v41  ;;  %v2186_v41 = vld [vmem:[#allocation8 + $0x64] sm:$0xf] }
 0x253   :  { %v513_v42 = vpop.f32.mrf.mxu3 }
 0x254   :  { %v1802_v42 = vld [vmem:[#allocation8 + $0x70] sm:$0xf0] }
 0x255   :  { %v660_v30 = vpop.f32.mrf.mxu2  ;;  %v1805_v44 = vor.u32 %v2186_v41, %v1802_v42  ;;  %v2233_v41 = vld [vmem:[#allocation8 + $0x1d4] sm:$0xf0]  ;;  %v2199_v42 = vld [vmem:[#allocation8 + $0xcc] sm:$0xf] }
 0x256   :  { %v661_v31 = vadd.f32 %v2288_v29, %v660_v30  ;;  %v1818_v29 = vld [vmem:[#allocation8 + $0x90] sm:$0xf0]  ;;  %v1945_v30 = vor.u32 %v2224_v27, %v1944_v25  ;;  %v2000_v27 = vld [vmem:[#allocation8 + $0x1e8] sm:$0xf] }
 0x258   :  { %v664_v32 = vmax.f32 %v661_v31, 0.0  ;;  %v1821_v31 = vor.u32 %v2190_v28, %v1818_v29  ;;  %1147 = vmatpush.bf16.msrb.mxu0 %v1945_v30  ;;  %v2237_v28 = vld [vmem:[#allocation8 + $0x1f4] sm:$0xf0]  ;;  %v1873_v29 = vor.u32 %v2205_v26, %v1872_v24 }
 0x259   :  { %v2001_v30 = vor.u32 %v2237_v28, %v2000_v27  ;;  %v2217_v24 = vld [vmem:[#allocation8 + $0x154] sm:$0xf0]  ;;  %v2183_v27 = vld [vmem:[#allocation8 + $0x4c] sm:$0xf]  ;;  %v1794_v28 = vld [vmem:[#allocation8 + $0x58] sm:$0xf0] }
 0x25a   :  { %v665_v33 = vpack.c.bf16 %v664_v32, %v664_v32  ;;  %v2222_v32 = vld [vmem:[#allocation8 + $0x184] sm:$0xf]  ;;  %1160 = vmatpush.bf16.msrb.mxu2 %v1821_v31  ;;  %v2203_v31 = vld [vmem:[#allocation8 + $0xec] sm:$0xf] }
 0x25c   :  { %1749 = vmatmul.msk.bf16.vlgmr.msra.gmra.mxu3 %vm149_vm0, %v665_v33  ;;  %v1946_v33 = vld [vmem:[#allocation8 + $0x190] sm:$0xf0]  ;;  %1148 = vmatpush.bf16.msrb.mxu0 %v1929_v40  ;;  %v1984_v40 = vld [vmem:[#allocation8 + $0x1c8] sm:$0xf] }
 0x25d   :  { %v662_v34 = vpop.f32.mrf.mxu2  ;;  %v1949_v35 = vor.u32 %v2222_v32, %v1946_v33  ;;  %v1874_v32 = vld [vmem:[#allocation8 + $0xf8] sm:$0xf0]  ;;  %v2235_v33 = vld [vmem:[#allocation8 + $0x1ec] sm:$0xf]  ;;  %v1985_v43 = vor.u32 %v2233_v41, %v1984_v40 }
 0x25e   :  { %v1800_v34 = vld [vmem:[#allocation8 + $0x60] sm:$0xf]  ;;  %1161 = vmatpush.bf16.msrb.mxu2 %v1805_v44  ;;  %v1858_v44 = vld [vmem:[#allocation8 + $0xd8] sm:$0xf0] }
 0x25f   :  { %v1801_v39 = vor.u32 %v2188_v36, %v1800_v34  ;;  %1173 = vmatpush.bf16.msrb.mxu3 %v1949_v35  ;;  %v1877_v34 = vor.u32 %v2203_v31, %v1874_v32  ;;  %v2002_v35 = vld [vmem:[#allocation8 + $0x1f8] sm:$0xf0]  ;;  %v1856_v36 = vld [vmem:[#allocation8 + $0xc8] sm:$0xf]  ;;  %v1861_v47 = vor.u32 %v2199_v42, %v1858_v44 }
 0x260   :  { %1149 = vmatpush.bf16.msrb.mxu0 %v1913_v56  ;;  %v2005_v38 = vor.u32 %v2235_v33, %v2002_v35  ;;  %v1969_v56 = vor.u32 %v2229_v53, %v1968_v51  ;;  %v1922_v31 = vld [vmem:[#allocation8 + $0x158] sm:$0xf0]  ;;  %v1776_v32 = vld [vmem:[#allocation8 + $0x28] sm:$0xf]  ;;  %v2181_v33 = vld [vmem:[#allocation8 + $0x34] sm:$0xf0] }
 0x261   :  { %1135 = vmatpush.bf16.msrb.mxu1 %v1801_v39  ;;  %v1857_v39 = vor.u32 %v2201_v37, %v1856_v36  ;;  %v1904_v35 = vld [vmem:[#allocation8 + $0x128] sm:$0xf]  ;;  %v2213_v36 = vld [vmem:[#allocation8 + $0x134] sm:$0xf0]  ;;  %v2179_v37 = vld [vmem:[#allocation8 + $0x2c] sm:$0xf]  ;;  %v1777_v41 = vor.u32 %v2181_v33, %v1776_v32 }
 0x262   :  { %1162 = vmatpush.bf16.msrb.mxu2 %v1789_v57  ;;  %v1845_v57 = vor.u32 %v2195_v54, %v1842_v55  ;;  %v1906_v40 = vld [vmem:[#allocation8 + $0x138] sm:$0xf0]  ;;  %v1905_v42 = vor.u32 %v2213_v36, %v1904_v35  ;;  %v2207_v51 = vld [vmem:[#allocation8 + $0x10c] sm:$0xf] }
 0x263   :  { %1174 = vmatpush.bf16.msrb.mxu3 %v1933_v48  ;;  %v1989_v48 = vor.u32 %v2231_v45, %v1986_v46  ;;  %v2177_v45 = vld [vmem:[#allocation8 + $0x14] sm:$0xf0]  ;;  %v1888_v46 = vld [vmem:[#allocation8 + $0x108] sm:$0xf] }
 0x264   :  { %1150 = vmatpush.bf16.msrb.mxu0 %v1897_v4  ;;  %v1825_v4 = vor.u32 %v2193_v62, %v1824_v60  ;;  %v2253_v60 = vld [vmem:[#allocation11 + $0x78] sm:$0xff] }
 0x265   :  { %1136 = vmatpush.bf16.msrb.mxu1 %v1785_v52  ;;  %v1841_v52 = vor.u32 %v2197_v50, %v1840_v49  ;;  %v2175_v49 = vld [vmem:[#allocation8 + $0xc] sm:$0xf]  ;;  %v1762_v50 = vld [vmem:[#allocation8 + $0x18] sm:$0xf0] }
 0x266   :  { %1163 = vmatpush.bf16.msrb.mxu2 %v1773_v5  ;;  %v1953_v5 = vor.u32 %v2225_v0, %v1952_v63  ;;  %v1765_v55 = vor.u32 %v2175_v49, %v1762_v50  ;;  %v2261_v63 = vld [vmem:[#allocation11 + $0xb8] sm:$0xff]  ;;  %v2244_v0 = vld [vmem:[#allocation11 + $0x30] sm:$0xff] }
 0x267   :  { %1175 = vmatpush.bf16.msrb.mxu3 %v1917_v61  ;;  %v1973_v61 = vor.u32 %v2227_v58, %v1970_v59  ;;  %v2245_v59 = vld [vmem:[#allocation11 + $0x38] sm:$0xff] }
 0x269   :  { %1137 = vmatpush.bf16.msrb.mxu1 %v1769_v3  ;;  %v2223_v3 = vld [vmem:[#allocation8 + $0x18c] sm:$0xf] }
 0x26b   :  { %1176 = vmatpush.bf16.msrb.mxu3 %v1901_v6  ;;  %v1954_v6 = vld [vmem:[#allocation8 + $0x198] sm:$0xf0] }
 0x2cf   :  { %v565_v8 = vpop.f32.mrf.mxu1 }
 0x2d0   :  { %v566_v9 = vadd.f32 %v2291_v7, %v565_v8  ;;  %v1829_v7 = vor.u32 %v2191_v1, %v1826_v2  ;;  %v1957_v8 = vor.u32 %v2223_v3, %v1954_v6  ;;  %v2252_v1 = vld [vmem:[#allocation11 + $0x70] sm:$0xff]  ;;  %v2243_v3 = vld [vmem:[#allocation11 + $0x28] sm:$0xff]  ;;  %v2250_v6 = vld [vmem:[#allocation11 + $0x60] sm:$0xff] }
 0x2d1   :  { %v2260_v2 = vld [vmem:[#allocation11 + $0xb0] sm:$0xff] }
 0x2d2   :  { %v569_v10 = vmax.f32 %v566_v9, 0.0  ;;  %v1808_v9 = vld [vmem:[#allocation8 + $0x68] sm:$0xf] }
 0x2d4   :  { %v570_v11 = vpack.c.bf16 %v569_v10, %v569_v10  ;;  %v2189_v10 = vld [vmem:[#allocation8 + $0x74] sm:$0xf0] }
 0x2d6   :  { %571 = vst.msk [vmem:[#allocation2 + $0x1] sm:$0x1] %vm261_vm2, %v570_v11  ;;  %v1936_v11 = vld [vmem:[#allocation8 + $0x168] sm:$0xf] }
 0x2d7   :  { %v567_v12 = vpop.f32.mrf.mxu1 }
 0x2d8   :  { %v1809_v12 = vor.u32 %v2189_v10, %v1808_v9  ;;  %v2249_v9 = vld [vmem:[#allocation11 + $0x58] sm:$0xff] }
 0x2d9   :  { %v2269_v10 = vld [vmem:[#allocation11 + $0xf8] sm:$0xff] }
 0x2df   :  { %v714_v16 = vpop.f32.mrf.mxu3 }
 0x2e0   :  { %v715_v17 = vadd.f32 %v2290_v15, %v714_v16  ;;  %v1880_v15 = vld [vmem:[#allocation8 + $0x100] sm:$0xf]  ;;  %v1753_v16 = vor.u32 %v2176_v14, %v1752_v13  ;;  %v2221_v13 = vld [vmem:[#allocation8 + $0x174] sm:$0xf0]  ;;  %v2187_v14 = vld [vmem:[#allocation8 + $0x6c] sm:$0xf] }
 0x2e2   :  { %v718_v18 = vmax.f32 %v715_v17, 0.0  ;;  %v2208_v17 = vld [vmem:[#allocation8 + $0x10c] sm:$0xf0]  ;;  %1138 = vmatpush.bf16.msrb.mxu1 %v1753_v16  ;;  %v1937_v16 = vor.u32 %v2221_v13, %v1936_v11  ;;  %v2248_v13 = vld [vmem:[#allocation11 + $0x50] sm:$0xff] }
 0x2e3   :  { %v2239_v11 = vld [vmem:[#allocation11 + $0x8] sm:$0xff] }
 0x2e4   :  { %v719_v19 = vpack.c.bf16 %v718_v18, %v718_v18  ;;  %v2174_v18 = vld [vmem:[#allocation8 + $0x4] sm:$0xf] }
 0x2e6   :  { %v721_v20 = vrot.slane %v719_v19, 3  ;;  %1183 = vmatpush.bf16.msra.mxu1 %v1873_v29  ;;  %v2215_v29 = vld [vmem:[#allocation8 + $0x14c] sm:$0xf] }
 0x2e7   :  { %v716_v21 = vpop.f32.mrf.mxu3 }
 0x2e8   :  { %v724_v22 = vsel %vm413_vm3, %v719_v19, %v721_v20  ;;  %v1754_v19 = vld [vmem:[#allocation8 + $0x10] sm:$0xf0]  ;;  %v1881_v20 = vor.u32 %v2208_v17, %v1880_v15  ;;  %v1810_v15 = vld [vmem:[#allocation8 + $0x78] sm:$0xf0] }
 0x2e9   :  { %726 = vrot.lane.b32.xlu0 %v724_v22, %s2452_s7  ;;  %v1757_v21 = vor.u32 %v2174_v18, %v1754_v19  ;;  %v2206_v22 = vld [vmem:[#allocation8 + $0x104] sm:$0xf]  ;;  %v1813_v17 = vor.u32 %v2187_v14, %v1810_v15  ;;  %v2219_v18 = vld [vmem:[#allocation8 + $0x16c] sm:$0xf]  ;;  %v1938_v19 = vld [vmem:[#allocation8 + $0x178] sm:$0xf0] }
 0x2ea   :  { %v1885_v25 = vor.u32 %v2206_v22, %v1882_v23  ;;  %1151 = vmatpush.bf16.msrb.mxu0 %v1881_v20  ;;  %1184 = vmatpush.bf16.msra.mxu1 %v1857_v39  ;;  %v1792_v20 = vld [vmem:[#allocation8 + $0x48] sm:$0xf]  ;;  %v2185_v22 = vld [vmem:[#allocation8 + $0x54] sm:$0xf0]  ;;  %v2211_v39 = vld [vmem:[#allocation8 + $0x12c] sm:$0xf] }
 0x2eb   :  { %1164 = vmatpush.bf16.msrb.mxu2 %v1757_v21  ;;  %v1941_v21 = vor.u32 %v2219_v18, %v1938_v19  ;;  %v1920_v23 = vld [vmem:[#allocation8 + $0x148] sm:$0xf]  ;;  %v2268_v14 = vld [vmem:[#allocation11 + $0xf0] sm:$0xff]  ;;  %v2267_v18 = vld [vmem:[#allocation11 + $0xe8] sm:$0xff] }
 0x2ec   :  { %1177 = vmatpush.bf16.msrb.mxu3 %v1885_v25  ;;  %v1793_v25 = vor.u32 %v2185_v22, %v1792_v20  ;;  %v1921_v26 = vor.u32 %v2217_v24, %v1920_v23  ;;  %v2238_v15 = vld [vmem:[#allocation11] sm:$0xff]  ;;  %v2257_v19 = vld [vmem:[#allocation11 + $0x98] sm:$0xff]  ;;  %v2256_v22 = vld [vmem:[#allocation11 + $0x90] sm:$0xff] }
 0x2ed   :  { %v2246_v20 = vld [vmem:[#allocation11 + $0x40] sm:$0xff]  ;;  %v2265_v23 = vld [vmem:[#allocation11 + $0xd8] sm:$0xff]  ;;  %v2255_v24 = vld [vmem:[#allocation11 + $0x88] sm:$0xff] }
 0x2ee   :  { %1196 = vmatpush.bf16.msra.mxu0 %v2001_v30  ;;  %1185 = vmatpush.bf16.msra.mxu1 %v1841_v52  ;;  %v1797_v30 = vor.u32 %v2183_v27, %v1794_v28  ;;  %v1890_v52 = vld [vmem:[#allocation8 + $0x118] sm:$0xf0]  ;;  %v2263_v27 = vld [vmem:[#allocation11 + $0xc8] sm:$0xff]  ;;  %v795_v28 = vld [vmem:[#allocation9] sm:$0xf] }
 0x2ef   :  { %1209 = vmatpush.bf16.msra.mxu2 %v1877_v34  ;;  %v1925_v34 = vor.u32 %v2215_v29, %v1922_v31  ;;  %v2262_v29 = vld [vmem:[#allocation11 + $0xc0] sm:$0xff]  ;;  %v798_v35 = vperm.slane %v795_v28, 1 }
 0x2f0   :  { %1222 = vmatpush.bf16.msra.mxu3 %v2005_v38  ;;  %v1778_v38 = vld [vmem:[#allocation8 + $0x38] sm:$0xf0] }
 0x2f1   :  { %v1781_v44 = vor.u32 %v2179_v37, %v1778_v38 }
 0x2f2   :  { %1197 = vmatpush.bf16.msra.mxu0 %v1985_v43  ;;  %1186 = vmatpush.bf16.msra.mxu1 %v1825_v4  ;;  %v1760_v43 = vld [vmem:[#allocation8 + $0x8] sm:$0xf]  ;;  %v2251_v4 = vld [vmem:[#allocation11 + $0x68] sm:$0xff] }
 0x2f3   :  { %1210 = vmatpush.bf16.msra.mxu2 %v1861_v47  ;;  %v2209_v47 = vld [vmem:[#allocation8 + $0x114] sm:$0xf0]  ;;  %v1761_v53 = vor.u32 %v2177_v45, %v1760_v43  ;;  %v799_v45 = vperm.slane %v795_v28, 2 }
 0x2f4   :  { %1223 = vmatpush.bf16.msra.mxu3 %v1989_v48  ;;  %v1909_v48 = vor.u32 %v2211_v39, %v1906_v40  ;;  %v1889_v54 = vor.u32 %v2209_v47, %v1888_v46 }
 0x2f6   :  { %1198 = vmatpush.bf16.msra.mxu0 %v1969_v56  ;;  %1187 = vmatpush.bf16.msra.mxu1 %v1809_v12  ;;  %v1893_v56 = vor.u32 %v2207_v51, %v1890_v52  ;;  %v2259_v12 = vld [vmem:[#allocation11 + $0xa8] sm:$0xff] }
 0x2f7   :  { %1211 = vmatpush.bf16.msra.mxu2 %v1845_v57 }
 0x2f8   :  { %1224 = vmatpush.bf16.msra.mxu3 %v1973_v61 }
 0x2fa   :  { %1199 = vmatpush.bf16.msra.mxu0 %v1953_v5  ;;  %1188 = vmatpush.bf16.msra.mxu1 %v1793_v25  ;;  %v2242_v5 = vld [vmem:[#allocation11 + $0x20] sm:$0xff]  ;;  %v2264_v25 = vld [vmem:[#allocation11 + $0xd0] sm:$0xff] }
 0x2fb   :  { %1212 = vmatpush.bf16.msra.mxu2 %v1829_v7  ;;  %v2241_v7 = vld [vmem:[#allocation11 + $0x18] sm:$0xff] }
 0x2fc   :  { %1225 = vmatpush.bf16.msra.mxu3 %v1957_v8  ;;  %v2240_v8 = vld [vmem:[#allocation11 + $0x10] sm:$0xff] }
 0x2fe   :  { %1200 = vmatpush.bf16.msra.mxu0 %v1937_v16  ;;  %1189 = vmatpush.bf16.msra.mxu1 %v1777_v41  ;;  %v2258_v16 = vld [vmem:[#allocation11 + $0xa0] sm:$0xff] }
 0x2ff   :  { %1213 = vmatpush.bf16.msra.mxu2 %v1813_v17  ;;  %v2247_v17 = vld [vmem:[#allocation11 + $0x48] sm:$0xff] }
 0x300   :  { %1226 = vmatpush.bf16.msra.mxu3 %v1941_v21  ;;  %v2266_v21 = vld [vmem:[#allocation11 + $0xe0] sm:$0xff] }
 0x302   :  { %1201 = vmatpush.bf16.msra.mxu0 %v1921_v26  ;;  %1190 = vmatpush.bf16.msra.mxu1 %v1761_v53  ;;  %v2254_v26 = vld [vmem:[#allocation11 + $0x80] sm:$0xff]  ;;  %v800_v53 = vperm.slane %v795_v28, 3 }
 0x303   :  { %1214 = vmatpush.bf16.msra.mxu2 %v1797_v30  ;;  %v797_v30 = vperm.slane %v795_v28, 0 }
 0x304   :  { %1227 = vmatpush.bf16.msra.mxu3 %v1925_v34 }
 0x306   :  { %1202 = vmatpush.bf16.msra.mxu0 %v1905_v42 }
 0x307   :  { %1215 = vmatpush.bf16.msra.mxu2 %v1781_v44 }
 0x308   :  { %1228 = vmatpush.bf16.msra.mxu3 %v1909_v48 }
 0x30a   :  { %1203 = vmatpush.bf16.msra.mxu0 %v1889_v54 }
 0x30b   :  { %1216 = vmatpush.bf16.msra.mxu2 %v1765_v55 }
 0x30c   :  { %1229 = vmatpush.bf16.msra.mxu3 %v1893_v56 }
 0x35b   :  { %v727_v57 = vpop.permute.xlu0 %726 }
 0x35c   :  { %729 = vst.msk [vmem:[#allocation2 + $0x1] sm:$0x1] %vm421_vm4, %v727_v57 }
 0x363   :  { %v730_v58 = vld [vmem:[#allocation2] sm:$0x3] }
 0x364   :  { %806 = vst [vmem:[#allocation1] ss:$9 sm:$0xff] %v730_v58 }
 0x36b   :  { %v807_v61 = vld [vmem:[#allocation1] sm:$0xff]  ;;  %v808_v62 = vld [vmem:[#allocation1 + $0x9] sm:$0xff] }
 0x36c   :  { %1139 = vmatmul.bf16.vlgmr.msrb.gmra.mxu1 %v807_v61  ;;  %1152 = vmatmul.bf16.vlgmr.msrb.gmra.mxu0 %v808_v62 }
 0x36d   :  { %1165 = vmatmul.bf16.vlgmr.msrb.gmra.mxu2 %v807_v61  ;;  %1178 = vmatmul.bf16.vlgmr.msrb.gmra.mxu3 %v808_v62 }
 0x36e   :  { %1503 = vmatpush.bf16.msrb.mxu1 %v2245_v59  ;;  %1516 = vmatpush.bf16.msrb.mxu0 %v2253_v60 }
 0x36f   :  { %1529 = vmatpush.bf16.msrb.mxu2 %v2261_v63  ;;  %1542 = vmatpush.bf16.msrb.mxu3 %v2269_v10 }
 0x372   :  { %1504 = vmatpush.bf16.msrb.mxu1 %v2244_v0  ;;  %1517 = vmatpush.bf16.msrb.mxu0 %v2252_v1 }
 0x373   :  { %1530 = vmatpush.bf16.msrb.mxu2 %v2260_v2  ;;  %1543 = vmatpush.bf16.msrb.mxu3 %v2268_v14 }
 0x376   :  { %1505 = vmatpush.bf16.msrb.mxu1 %v2243_v3  ;;  %1518 = vmatpush.bf16.msrb.mxu0 %v2251_v4 }
 0x377   :  { %1531 = vmatpush.bf16.msrb.mxu2 %v2259_v12  ;;  %1544 = vmatpush.bf16.msrb.mxu3 %v2267_v18 }
 0x37a   :  { %1506 = vmatpush.bf16.msrb.mxu1 %v2242_v5  ;;  %1519 = vmatpush.bf16.msrb.mxu0 %v2250_v6  ;;  %v2292_v6 = vld [vmem:[%s2712_s10] ss:$0 sm:$0xff] }
 0x37b   :  { %1532 = vmatpush.bf16.msrb.mxu2 %v2258_v16  ;;  %1545 = vmatpush.bf16.msrb.mxu3 %v2266_v21 }
 0x37c   :  { %1191 = vmatmul.bf16.vlgmr.msra.gmra.mxu1 %v807_v61  ;;  %1204 = vmatmul.bf16.vlgmr.msra.gmra.mxu0 %v808_v62 }
 0x37d   :  { %1217 = vmatmul.bf16.vlgmr.msra.gmra.mxu2 %v807_v61  ;;  %1230 = vmatmul.bf16.vlgmr.msra.gmra.mxu3 %v808_v62 }
 0x37e   :  { %1507 = vmatpush.bf16.msrb.mxu1 %v2241_v7  ;;  %1520 = vmatpush.bf16.msrb.mxu0 %v2249_v9 }
 0x37f   :  { %1533 = vmatpush.bf16.msrb.mxu2 %v2257_v19  ;;  %1546 = vmatpush.bf16.msrb.mxu3 %v2265_v23 }
 0x382   :  { %1508 = vmatpush.bf16.msrb.mxu1 %v2240_v8  ;;  %1521 = vmatpush.bf16.msrb.mxu0 %v2248_v13 }
 0x383   :  { %1534 = vmatpush.bf16.msrb.mxu2 %v2256_v22  ;;  %1547 = vmatpush.bf16.msrb.mxu3 %v2264_v25 }
 0x386   :  { %1509 = vmatpush.bf16.msrb.mxu1 %v2239_v11  ;;  %1522 = vmatpush.bf16.msrb.mxu0 %v2247_v17 }
 0x387   :  { %1535 = vmatpush.bf16.msrb.mxu2 %v2255_v24  ;;  %1548 = vmatpush.bf16.msrb.mxu3 %v2263_v27 }
 0x38a   :  { %1510 = vmatpush.bf16.msrb.mxu1 %v2238_v15  ;;  %1523 = vmatpush.bf16.msrb.mxu0 %v2246_v20 }
 0x38b   :  { %1536 = vmatpush.bf16.msrb.mxu2 %v2254_v26  ;;  %1549 = vmatpush.bf16.msrb.mxu3 %v2262_v29 }
 0x3e9   :  { %v1140_v31 = vpop.f32.mrf.mxu1  ;;  %v1153_v32 = vpop.f32.mrf.mxu0 }
 0x3ea   :  { %v1141_v33 = vadd.f32 %v1140_v31, %v797_v30 }
 0x3ec   :  { %v1154_v34 = vadd.f32 %v1153_v32, %v1141_v33 }
 0x3ee   :  { %v1235_v36 = vmax.f32 %v1154_v34, 0.0 }
 0x3f0   :  { %v1239_v37 = vpack.c.bf16 %v1235_v36, %v1235_v36  ;;  %v1166_v38 = vpop.f32.mrf.mxu2  ;;  %v1179_v39 = vpop.f32.mrf.mxu3 }
 0x3f1   :  { %v1167_v40 = vadd.f32 %v1166_v38, %v798_v35  ;;  %v1142_v41 = vpop.f32.mrf.mxu1  ;;  %v1155_v42 = vpop.f32.mrf.mxu0 }
 0x3f2   :  { %1511 = vmatmul.bf16.vlgmr.msrb.gmra.mxu1 %v1239_v37 }
 0x3f3   :  { %v1180_v43 = vadd.f32 %v1179_v39, %v1167_v40 }
 0x3f5   :  { %v1236_v44 = vmax.f32 %v1180_v43, 0.0 }
 0x3f7   :  { %v1240_v46 = vpack.c.bf16 %v1236_v44, %v1236_v44 }
 0x3f8   :  { %v1168_v47 = vpop.f32.mrf.mxu2  ;;  %v1181_v48 = vpop.f32.mrf.mxu3 }
 0x3f9   :  { %1524 = vmatmul.bf16.vlgmr.msrb.gmra.mxu0 %v1240_v46  ;;  %v1192_v49 = vpop.f32.mrf.mxu1  ;;  %v1205_v50 = vpop.f32.mrf.mxu0 }
 0x3fa   :  { %v1193_v51 = vadd.f32 %v1192_v49, %v799_v45 }
 0x3fc   :  { %v1206_v52 = vadd.f32 %v1205_v50, %v1193_v51 }
 0x3fe   :  { %v1237_v54 = vmax.f32 %v1206_v52, 0.0 }
 0x400   :  { %v1241_v55 = vpack.c.bf16 %v1237_v54, %v1237_v54  ;;  %v1218_v56 = vpop.f32.mrf.mxu2  ;;  %v1231_v57 = vpop.f32.mrf.mxu3 }
 0x401   :  { %v1219_v58 = vadd.f32 %v1218_v56, %v800_v53  ;;  %v1194_v59 = vpop.f32.mrf.mxu1  ;;  %v1207_v60 = vpop.f32.mrf.mxu0 }
 0x402   :  { %1537 = vmatmul.bf16.vlgmr.msrb.gmra.mxu2 %v1241_v55 }
 0x403   :  { %v1232_v61 = vadd.f32 %v1231_v57, %v1219_v58 }
 0x405   :  { %v1238_v62 = vmax.f32 %v1232_v61, 0.0 }
 0x407   :  { %v1242_v63 = vpack.c.bf16 %v1238_v62, %v1238_v62 }
 0x408   :  { %v1220_v0 = vpop.f32.mrf.mxu2  ;;  %v1233_v1 = vpop.f32.mrf.mxu3 }
 0x409   :  { %1550 = vmatmul.bf16.vlgmr.msrb.gmra.mxu3 %v1242_v63 }
 0x46f   :  { %v1512_v2 = vpop.f32.mrf.mxu1 }
 0x470   :  { %v1513_v8 = vadd.f32 %v2292_v6, %v1512_v2 }
 0x476   :  { %v1525_v3 = vpop.f32.mrf.mxu0 }
 0x477   :  { %v1514_v4 = vpop.f32.mrf.mxu1  ;;  %v1526_v9 = vadd.f32 %v1525_v3, %v1513_v8 }
 0x47e   :  { %v1527_v5 = vpop.f32.mrf.mxu0 }
 0x485   :  { %v1538_v7 = vpop.f32.mrf.mxu2 }
 0x486   :  { %v1539_v10 = vadd.f32 %v1538_v7, %v1526_v9 }
 0x48c   :  { %v1551_v11 = vpop.f32.mrf.mxu3 }
 0x48d   :  { %v1552_v12 = vadd.f32 %v1551_v11, %v1539_v10  ;;  %v1540_v13 = vpop.f32.mrf.mxu2 }
 0x48f   :  { %1555 = vst [vmem:[#allocation12] sm:$0x3] %v1552_v12 }
 0x490   :  { %1566 = dma.vmem_to_hbm [thread:$0]  %s1562_s0, 32, %s1564_s9, [#allocation5]  }
 0x494   :  { %v1553_v14 = vpop.f32.mrf.mxu3 }
 0x495   :  { %2443 = dma.done.wait [#allocation5], 32  }
 0x496   :  { %2444 = vsyncadd [#allocation5], 4294967264 }
 0x497   :  { %1571 = vsyncpa [#allocation4], 1 }
 0x498   :  { %1572 = vsyncpa [#allocation7], 1 }
 0x499   :  { %1573 = vsyncpa [#allocation10], 1 }
 0x49a   :  { %1574 = vsyncpa [#allocation5], 1 }

</bundles_post_ra>
